<compile_context>
chip_gen: v6e
topology: v6e:2x2x1
jax: 0.10.0
libtpu: 0.0.40
codegen_flags: <defaults>
</compile_context>

<pallas_src>
import jax
import jax.numpy as jnp
from jax.experimental import pallas as pl
from jax.experimental.pallas import tpu as pltpu

# ---------------- small synthetic config ----------------
B = 2            # batch
S = 16           # sequence length
D = 64           # hidden_size
H = 4            # num_attention_heads
KVH = 2          # num_key_value_heads (GQA)
HD = D // H      # head_dim = 16
HD2 = HD // 2    # half head_dim (RoPE halves)
I = 128          # intermediate_size
EPS = 1e-6       # rms_norm_eps

GROUP = H // KVH
N = B * S        # flattened rows
QW = H * HD      # 64  q lanes in fused qkv
KW = KVH * HD    # 32  k lanes
VW = KVH * HD    # 32  v lanes
QKVW = QW + KW + VW          # 128
TAB_ROWS = S + 2 + H + KVH   # packed small-params table rows


def _rms_norm(x, w):
    # Qwen2RMSNorm (f32): x * rsqrt(mean(x^2) + eps) * weight
    var = jnp.mean(x * x, axis=-1, keepdims=True)
    return x * jax.lax.rsqrt(var + EPS) * w


def encoder_layer_kernel(x_ref, tab_ref, wqkv_ref, wo_ref, wgu_ref, wd_ref, out_ref):
    x = x_ref[...]                                        # (N, D) f32
    tab = tab_ref[...]                                    # (TAB_ROWS, 128) f32

    # unpack the small-params table (pure value slicing, no extra DMAs)
    cos = tab[:S, :HD][None, None]                        # (1, 1, S, HD)
    sin = tab[:S, HD:2 * HD][None, None]
    ln1_w = tab[S:S + 1, :D]                              # (1, D)
    ln2_w = tab[S:S + 1, D:2 * D]
    bqkv = tab[S + 1:S + 2, :QKVW]                        # (1, 128)
    gq = tab[S + 2:S + 2 + H, :HD][None, :, None, :]      # (1, H, 1, HD)  pre-scaled
    gk = tab[S + 2 + H:S + 2 + H + KVH, :HD][None, :, None, :]  # (1, KVH, 1, HD)

    # ---------------- input_layernorm (f32) ----------------------------------------
    h = _rms_norm(x, ln1_w)
    hb = h.astype(jnp.bfloat16)

    # ---------------- fused QKV projection: ONE lane-dense matmul ------------------
    qkv = jnp.dot(hb, wqkv_ref[...], preferred_element_type=jnp.float32) + bqkv

    # head split: layout only (static lane slices + leading-dim reshapes + stack)
    def split_heads(start, n_heads):
        return jnp.stack(
            [qkv[:, start + hh * HD:start + (hh + 1) * HD].reshape(B, S, HD)
             for hh in range(n_heads)], axis=1)           # (B, n_heads, S, HD)

    q4 = split_heads(0, H)                                # (B, H,   S, HD)
    k4 = split_heads(QW, KVH)                             # (B, KVH, S, HD)
    v4 = split_heads(QW + KW, KVH)                        # (B, KVH, S, HD)

    # ---------------- RoPE (rotate_half) + per-head L2 qk-norm (f32) ---------------
    def rope_and_norm(t, gamma):
        a = t[..., :HD2]
        b = t[..., HD2:]
        rot = jnp.concatenate([-b, a], axis=-1)           # rotate_half
        r = t * cos + rot * sin
        # F.normalize(dim=-1); sqrt(HD) MultiHeadRMSNorm scales and the 1/sqrt(HD)
        # attention scaling are pre-folded into gq (wrapper) -- do not re-apply.
        ssq = jnp.sum(r * r, axis=-1, keepdims=True)
        inv = jax.lax.rsqrt(jnp.maximum(ssq, 1e-24))      # == 1 / max(||r||, 1e-12)
        return r * inv * gamma

    qn4 = rope_and_norm(q4, gq)                           # (B, H,   S, HD) f32
    kn4 = rope_and_norm(k4, gk)                           # (B, KVH, S, HD) f32

    # fold GQA query groups into rows: (B, H, S, HD) -> (B*KVH, GROUP*S, HD)
    grouped = []
    for kvh in range(KVH):
        rows = [qn4[:, kvh * GROUP + gg] for gg in range(GROUP)]   # (B, S, HD) each
        grouped.append(jnp.concatenate(rows, axis=1))              # (B, GROUP*S, HD)
    qg = jnp.stack(grouped, axis=1).reshape(B * KVH, GROUP * S, HD).astype(jnp.bfloat16)
    kg = kn4.reshape(B * KVH, S, HD).astype(jnp.bfloat16)
    vg = v4.reshape(B * KVH, S, HD).astype(jnp.bfloat16)

    # ---------------- bidirectional SDPA (no mask; scaling pre-folded) -------------
    scores = jax.lax.dot_general(qg, kg, (((2,), (2,)), ((0,), (0,))),
                                 preferred_element_type=jnp.float32)  # (B*KVH, GROUP*S, S)
    scores = scores - jnp.max(scores, axis=-1, keepdims=True)          # cheap & safe
    p = jnp.exp(scores)
    p = p * pl.reciprocal(jnp.sum(p, axis=-1, keepdims=True), approx=True)
    ctx = jax.lax.dot_general(p.astype(jnp.bfloat16), vg, (((2,), (1,)), ((0,), (0,))),
                              preferred_element_type=jnp.float32)      # (B*KVH, GROUP*S, HD)

    # back to row-major (N, H*HD): layout only (slices + one lane concat)
    ctx4 = ctx.reshape(B, KVH, GROUP * S, HD)
    head_cols = []
    for hh in range(H):
        kvh, gg = divmod(hh, GROUP)
        head_cols.append(ctx4[:, kvh, gg * S:(gg + 1) * S, :])         # (B, S, HD)
    ctx2 = jnp.concatenate(head_cols, axis=-1).reshape(N, H * HD)      # (N, 64)

    # o_proj: ONE matmul (no bias in Qwen2 o_proj)
    attn = jnp.dot(ctx2.astype(jnp.bfloat16), wo_ref[...],
                   preferred_element_type=jnp.float32)                 # (N, D)
    h1 = x + attn                                                      # residual (f32)

    # ---------------- post_attention_layernorm + fused gate|up SwiGLU MLP ----------
    h2 = _rms_norm(h1, ln2_w).astype(jnp.bfloat16)
    gu = jnp.dot(h2, wgu_ref[...], preferred_element_type=jnp.float32)  # (N, 2I)
    g = gu[:, :I]
    u = gu[:, I:]
    act = g * jax.nn.sigmoid(g)                                         # SiLU (EUP)
    mlp = jnp.dot((act * u).astype(jnp.bfloat16), wd_ref[...],
                  preferred_element_type=jnp.float32)

    out_ref[...] = (h1 + mlp).astype(out_ref.dtype)


def _pack_params(params, cos, sin):
    """Pack torch-style params into fused bf16 weights + one small f32 table."""
    f32, bf16 = jnp.float32, jnp.bfloat16

    wqkv = jnp.concatenate([params["wq"], params["wk"], params["wv"]], axis=1).astype(bf16)
    wgu = jnp.concatenate([params["wg"], params["wu"]], axis=1).astype(bf16)

    tab = jnp.zeros((TAB_ROWS, 128), f32)
    tab = tab.at[:S, :HD].set(cos.astype(f32))
    tab = tab.at[:S, HD:2 * HD].set(sin.astype(f32))
    tab = tab.at[S, :D].set(params["ln1"].reshape(-1))
    tab = tab.at[S, D:2 * D].set(params["ln2"].reshape(-1))
    bqkv = jnp.concatenate([params["bq"].reshape(-1), params["bk"].reshape(-1),
                            params["bv"].reshape(-1)])
    tab = tab.at[S + 1, :QKVW].set(bqkv)
    # fold mh_scale(q) * mh_scale(k) * (1/sqrt(HD)) == sqrt(HD) into the q gammas
    tab = tab.at[S + 2:S + 2 + H, :HD].set(params["gq"] * (HD ** 0.5))
    tab = tab.at[S + 2 + H:S + 2 + H + KVH, :HD].set(params["gk"])

    return dict(tab=tab, wqkv=wqkv, wo=params["wo"].astype(bf16),
                wgu=wgu, wd=params["wd"].astype(bf16))


def qwen2_encoder_layer(x, cos, sin, params):
    pk = _pack_params(params, cos, sin)
    x2 = x.reshape(N, D).astype(jnp.float32)

    out2 = pl.pallas_call(
        encoder_layer_kernel,
        out_shape=jax.ShapeDtypeStruct((N, D), jnp.float32),
        compiler_params=pltpu.CompilerParams(vmem_limit_bytes=32 * 1024 * 1024),
    )(x2, pk["tab"], pk["wqkv"], pk["wo"], pk["wgu"], pk["wd"])
    return out2.reshape(B, S, D).astype(x.dtype)


# ---------------- pure-JAX f32 reference (mirrors the torch module) ----------------
def reference_layer(x, cos, sin, params):
    def rotate_half(t):
        hh = t.shape[-1] // 2
        return jnp.concatenate([-t[..., hh:], t[..., :hh]], axis=-1)

    outs = []
    for b in range(B):
        xb = x[b].astype(jnp.float32)                                   # (S, D)
        h = _rms_norm(xb, params["ln1"][0])
        q = (h @ params["wq"] + params["bq"][0]).reshape(S, H, HD).transpose(1, 0, 2)
        k = (h @ params["wk"] + params["bk"][0]).reshape(S, KVH, HD).transpose(1, 0, 2)
        v = (h @ params["wv"] + params["bv"][0]).reshape(S, KVH, HD).transpose(1, 0, 2)
        q = q * cos[None] + rotate_half(q) * sin[None]
        k = k * cos[None] + rotate_half(k) * sin[None]
        qn = q / jnp.maximum(jnp.linalg.norm(q, axis=-1, keepdims=True), 1e-12)
        qn = qn * params["gq"][:, None, :] * (HD ** 0.5)
        kn = k / jnp.maximum(jnp.linalg.norm(k, axis=-1, keepdims=True), 1e-12)
        kn = kn * params["gk"][:, None, :] * (HD ** 0.5)
        kr = jnp.repeat(kn, GROUP, axis=0)
        vr = jnp.repeat(v, GROUP, axis=0)
        scores = jnp.einsum("hqd,hkd->hqk", qn, kr) / (HD ** 0.5)
        pw = jax.nn.softmax(scores, axis=-1)
        ctx = jnp.einsum("hqk,hkd->hqd", pw, vr)                        # (H, S, HD)
        attn = ctx.transpose(1, 0, 2).reshape(S, H * HD) @ params["wo"]
        h1 = xb + attn
        h2 = _rms_norm(h1, params["ln2"][0])
        g = h2 @ params["wg"]
        u = h2 @ params["wu"]
        outs.append(h1 + (jax.nn.silu(g) * u) @ params["wd"])
    return jnp.stack(outs, axis=0)


def make_params(key):
    keys = jax.random.split(key, 12)
    init = lambda k, shape: (0.02 * jax.random.normal(k, shape)).astype(jnp.float32)
    return {
        "wq": init(keys[0], (D, H * HD)),
        "bq": init(keys[1], (1, H * HD)),
        "wk": init(keys[2], (D, KVH * HD)),
        "bk": init(keys[3], (1, KVH * HD)),
        "wv": init(keys[4], (D, KVH * HD)),
        "bv": init(keys[5], (1, KVH * HD)),
        "wo": init(keys[6], (H * HD, D)),
        "gq": jnp.ones((H, HD), jnp.float32),    # MultiHeadRMSNorm gammas (init ones)
        "gk": jnp.ones((KVH, HD), jnp.float32),
        "ln1": jnp.ones((1, D), jnp.float32),    # RMSNorm weights (init ones)
        "ln2": jnp.ones((1, D), jnp.float32),
        "wg": init(keys[7], (D, I)),
        "wu": init(keys[8], (D, I)),
        "wd": init(keys[9], (I, D)),
    }


def make_rope(seq_len, head_dim, theta=10000.0):
    inv_freq = 1.0 / (theta ** (jnp.arange(0, head_dim, 2, dtype=jnp.float32) / head_dim))
    pos = jnp.arange(seq_len, dtype=jnp.float32)
    freqs = pos[:, None] * inv_freq[None, :]            # (S, HD/2)
    emb = jnp.concatenate([freqs, freqs], axis=-1)      # (S, HD)
    return jnp.cos(emb), jnp.sin(emb)


if __name__ == "__main__":
    key = jax.random.PRNGKey(0)
    kx, kp = jax.random.split(key)
    x = jax.random.normal(kx, (B, S, D), dtype=jnp.float32)
    cos, sin = make_rope(S, HD)
    params = make_params(kp)

    out = qwen2_encoder_layer(x, cos, sin, params)
    jax.block_until_ready(out)
    assert out.shape == (B, S, D)

    # loose structural check vs. f32 reference (kernel uses bf16 MXU operands
    # and an approx EUP reciprocal, so exact match is not expected)
    ref = reference_layer(x, cos, sin, params)
    err = float(jnp.max(jnp.abs(out - ref)))
    assert err < 5e-2, f"kernel/reference mismatch: max abs err = {err}"

    print("KERNEL_OK")
</pallas_src>

<mosaic_0001>
module attributes {stable_mosaic.version = 11 : i64} {
  func.func @encoder_layer_kernel(%arg0: memref<32x64xf32, #tpu.memory_space<vmem>>, %arg1: memref<24x128xf32, #tpu.memory_space<vmem>>, %arg2: memref<64x128xbf16, #tpu.memory_space<vmem>>, %arg3: memref<64x64xbf16, #tpu.memory_space<vmem>>, %arg4: memref<64x256xbf16, #tpu.memory_space<vmem>>, %arg5: memref<128x64xbf16, #tpu.memory_space<vmem>>, %arg6: memref<32x64xf32, #tpu.memory_space<vmem>>) attributes {dimension_semantics = [], scalar_prefetch = 0 : i64, scratch_operands = 0 : i64, tpu.core_type = #tpu.core_type<tc>} {
    %c0 = arith.constant 0 : index
    %c0_0 = arith.constant 0 : index
    %0 = vector.load %arg0[%c0, %c0_0] : memref<32x64xf32, #tpu.memory_space<vmem>>, vector<32x64xf32>
    %c0_1 = arith.constant 0 : index
    %c0_2 = arith.constant 0 : index
    %1 = vector.load %arg1[%c0_1, %c0_2] : memref<24x128xf32, #tpu.memory_space<vmem>>, vector<24x128xf32>
    %2 = vector.extract_strided_slice %1 {offsets = [0, 0], sizes = [16, 16], strides = [1, 1]} : vector<24x128xf32> to vector<16x16xf32>
    %3 = vector.shape_cast %2 : vector<16x16xf32> to vector<1x1x16x16xf32>
    %4 = vector.extract_strided_slice %1 {offsets = [0, 16], sizes = [16, 16], strides = [1, 1]} : vector<24x128xf32> to vector<16x16xf32>
    %5 = vector.shape_cast %4 : vector<16x16xf32> to vector<1x1x16x16xf32>
    %6 = vector.extract_strided_slice %1 {offsets = [16, 0], sizes = [1, 64], strides = [1, 1]} : vector<24x128xf32> to vector<1x64xf32>
    %7 = vector.extract_strided_slice %1 {offsets = [16, 64], sizes = [1, 64], strides = [1, 1]} : vector<24x128xf32> to vector<1x64xf32>
    %8 = vector.extract_strided_slice %1 {offsets = [17, 0], sizes = [1, 128], strides = [1, 1]} : vector<24x128xf32> to vector<1x128xf32>
    %9 = vector.extract_strided_slice %1 {offsets = [18, 0], sizes = [4, 16], strides = [1, 1]} : vector<24x128xf32> to vector<4x16xf32>
    %10 = vector.shape_cast %9 : vector<4x16xf32> to vector<1x4x1x16xf32>
    %11 = vector.extract_strided_slice %1 {offsets = [22, 0], sizes = [2, 16], strides = [1, 1]} : vector<24x128xf32> to vector<2x16xf32>
    %12 = vector.shape_cast %11 : vector<2x16xf32> to vector<1x2x1x16xf32>
    %13 = arith.mulf %0, %0 : vector<32x64xf32>
    %cst = arith.constant dense<0.000000e+00> : vector<32xf32>
    %14 = vector.multi_reduction <add>, %13, %cst [1] : vector<32x64xf32> to vector<32xf32>
    %15 = vector.shape_cast %14 : vector<32xf32> to vector<32x1xf32>
    %cst_3 = arith.constant 6.400000e+01 : f32
    %16 = vector.broadcast %cst_3 : f32 to vector<32x1xf32>
    %17 = arith.divf %15, %16 : vector<32x1xf32>
    %cst_4 = arith.constant 9.99999997E-7 : f32
    %18 = vector.broadcast %cst_4 : f32 to vector<32x1xf32>
    %19 = arith.addf %17, %18 : vector<32x1xf32>
    %20 = math.rsqrt %19 : vector<32x1xf32>
    %21 = vector.broadcast %20 : vector<32x1xf32> to vector<32x64xf32>
    %22 = arith.mulf %0, %21 : vector<32x64xf32>
    %23 = vector.broadcast %6 : vector<1x64xf32> to vector<32x64xf32>
    %24 = arith.mulf %22, %23 : vector<32x64xf32>
    %25 = arith.truncf %24 : vector<32x64xf32> to vector<32x64xbf16>
    %c0_5 = arith.constant 0 : index
    %c0_6 = arith.constant 0 : index
    %26 = vector.load %arg2[%c0_5, %c0_6] : memref<64x128xbf16, #tpu.memory_space<vmem>>, vector<64x128xbf16>
    %cst_7 = arith.constant dense<0.000000e+00> : vector<32x128xf32>
    %27 = tpu.matmul %25, %26, %cst_7 {dimension_numbers = #tpu.dot_dimension_numbers<[1], [0], [0], [1], [0, 0, 1, 1], [], []>} : vector<32x64xbf16>, vector<64x128xbf16>, vector<32x128xf32> -> vector<32x128xf32>
    %28 = vector.broadcast %8 : vector<1x128xf32> to vector<32x128xf32>
    %29 = arith.addf %27, %28 : vector<32x128xf32>
    %30 = vector.extract_strided_slice %29 {offsets = [0, 0], sizes = [32, 16], strides = [1, 1]} : vector<32x128xf32> to vector<32x16xf32>
    %31 = vector.shape_cast %30 : vector<32x16xf32> to vector<2x16x16xf32>
    %32 = vector.extract_strided_slice %29 {offsets = [0, 16], sizes = [32, 16], strides = [1, 1]} : vector<32x128xf32> to vector<32x16xf32>
    %33 = vector.shape_cast %32 : vector<32x16xf32> to vector<2x16x16xf32>
    %34 = vector.extract_strided_slice %29 {offsets = [0, 32], sizes = [32, 16], strides = [1, 1]} : vector<32x128xf32> to vector<32x16xf32>
    %35 = vector.shape_cast %34 : vector<32x16xf32> to vector<2x16x16xf32>
    %36 = vector.extract_strided_slice %29 {offsets = [0, 48], sizes = [32, 16], strides = [1, 1]} : vector<32x128xf32> to vector<32x16xf32>
    %37 = vector.shape_cast %36 : vector<32x16xf32> to vector<2x16x16xf32>
    %38 = vector.shape_cast %31 : vector<2x16x16xf32> to vector<2x1x16x16xf32>
    %39 = vector.shape_cast %33 : vector<2x16x16xf32> to vector<2x1x16x16xf32>
    %40 = vector.shape_cast %35 : vector<2x16x16xf32> to vector<2x1x16x16xf32>
    %41 = vector.shape_cast %37 : vector<2x16x16xf32> to vector<2x1x16x16xf32>
    %42 = tpu.concatenate %38, %39, %40, %41 in 1 : vector<2x1x16x16xf32>, vector<2x1x16x16xf32>, vector<2x1x16x16xf32>, vector<2x1x16x16xf32> -> vector<2x4x16x16xf32>
    %43 = vector.extract_strided_slice %29 {offsets = [0, 64], sizes = [32, 16], strides = [1, 1]} : vector<32x128xf32> to vector<32x16xf32>
    %44 = vector.shape_cast %43 : vector<32x16xf32> to vector<2x16x16xf32>
    %45 = vector.extract_strided_slice %29 {offsets = [0, 80], sizes = [32, 16], strides = [1, 1]} : vector<32x128xf32> to vector<32x16xf32>
    %46 = vector.shape_cast %45 : vector<32x16xf32> to vector<2x16x16xf32>
    %47 = vector.shape_cast %44 : vector<2x16x16xf32> to vector<2x1x16x16xf32>
    %48 = vector.shape_cast %46 : vector<2x16x16xf32> to vector<2x1x16x16xf32>
    %49 = tpu.concatenate %47, %48 in 1 : vector<2x1x16x16xf32>, vector<2x1x16x16xf32> -> vector<2x2x16x16xf32>
    %50 = vector.extract_strided_slice %29 {offsets = [0, 96], sizes = [32, 16], strides = [1, 1]} : vector<32x128xf32> to vector<32x16xf32>
    %51 = vector.shape_cast %50 : vector<32x16xf32> to vector<2x16x16xf32>
    %52 = vector.extract_strided_slice %29 {offsets = [0, 112], sizes = [32, 16], strides = [1, 1]} : vector<32x128xf32> to vector<32x16xf32>
    %53 = vector.shape_cast %52 : vector<32x16xf32> to vector<2x16x16xf32>
    %54 = vector.shape_cast %51 : vector<2x16x16xf32> to vector<2x1x16x16xf32>
    %55 = vector.shape_cast %53 : vector<2x16x16xf32> to vector<2x1x16x16xf32>
    %56 = tpu.concatenate %54, %55 in 1 : vector<2x1x16x16xf32>, vector<2x1x16x16xf32> -> vector<2x2x16x16xf32>
    %57 = vector.extract_strided_slice %42 {offsets = [0, 0, 0, 0], sizes = [2, 4, 16, 8], strides = [1, 1, 1, 1]} : vector<2x4x16x16xf32> to vector<2x4x16x8xf32>
    %58 = vector.extract_strided_slice %42 {offsets = [0, 0, 0, 8], sizes = [2, 4, 16, 8], strides = [1, 1, 1, 1]} : vector<2x4x16x16xf32> to vector<2x4x16x8xf32>
    %cst_8 = arith.constant 0.000000e+00 : f32
    %59 = vector.broadcast %cst_8 : f32 to vector<2x4x16x8xf32>
    %60 = arith.subf %59, %58 : vector<2x4x16x8xf32>
    %61 = tpu.concatenate %60, %57 in 3 : vector<2x4x16x8xf32>, vector<2x4x16x8xf32> -> vector<2x4x16x16xf32>
    %62 = vector.broadcast %3 : vector<1x1x16x16xf32> to vector<2x4x16x16xf32>
    %63 = arith.mulf %42, %62 : vector<2x4x16x16xf32>
    %64 = vector.broadcast %5 : vector<1x1x16x16xf32> to vector<2x4x16x16xf32>
    %65 = arith.mulf %61, %64 : vector<2x4x16x16xf32>
    %66 = arith.addf %63, %65 : vector<2x4x16x16xf32>
    %67 = arith.mulf %66, %66 : vector<2x4x16x16xf32>
    %cst_9 = arith.constant dense<0.000000e+00> : vector<2x4x16xf32>
    %68 = vector.multi_reduction <add>, %67, %cst_9 [3] : vector<2x4x16x16xf32> to vector<2x4x16xf32>
    %69 = vector.shape_cast %68 : vector<2x4x16xf32> to vector<2x4x16x1xf32>
    %cst_10 = arith.constant 1.000000e-24 : f32
    %70 = vector.broadcast %cst_10 : f32 to vector<2x4x16x1xf32>
    %71 = arith.maximumf %69, %70 : vector<2x4x16x1xf32>
    %72 = math.rsqrt %71 : vector<2x4x16x1xf32>
    %73 = vector.broadcast %72 : vector<2x4x16x1xf32> to vector<2x4x16x16xf32>
    %74 = arith.mulf %66, %73 : vector<2x4x16x16xf32>
    %75 = vector.broadcast %10 : vector<1x4x1x16xf32> to vector<2x4x16x16xf32>
    %76 = arith.mulf %74, %75 : vector<2x4x16x16xf32>
    %77 = vector.extract_strided_slice %49 {offsets = [0, 0, 0, 0], sizes = [2, 2, 16, 8], strides = [1, 1, 1, 1]} : vector<2x2x16x16xf32> to vector<2x2x16x8xf32>
    %78 = vector.extract_strided_slice %49 {offsets = [0, 0, 0, 8], sizes = [2, 2, 16, 8], strides = [1, 1, 1, 1]} : vector<2x2x16x16xf32> to vector<2x2x16x8xf32>
    %cst_11 = arith.constant 0.000000e+00 : f32
    %79 = vector.broadcast %cst_11 : f32 to vector<2x2x16x8xf32>
    %80 = arith.subf %79, %78 : vector<2x2x16x8xf32>
    %81 = tpu.concatenate %80, %77 in 3 : vector<2x2x16x8xf32>, vector<2x2x16x8xf32> -> vector<2x2x16x16xf32>
    %82 = vector.broadcast %3 : vector<1x1x16x16xf32> to vector<2x2x16x16xf32>
    %83 = arith.mulf %49, %82 : vector<2x2x16x16xf32>
    %84 = vector.broadcast %5 : vector<1x1x16x16xf32> to vector<2x2x16x16xf32>
    %85 = arith.mulf %81, %84 : vector<2x2x16x16xf32>
    %86 = arith.addf %83, %85 : vector<2x2x16x16xf32>
    %87 = arith.mulf %86, %86 : vector<2x2x16x16xf32>
    %cst_12 = arith.constant dense<0.000000e+00> : vector<2x2x16xf32>
    %88 = vector.multi_reduction <add>, %87, %cst_12 [3] : vector<2x2x16x16xf32> to vector<2x2x16xf32>
    %89 = vector.shape_cast %88 : vector<2x2x16xf32> to vector<2x2x16x1xf32>
    %cst_13 = arith.constant 1.000000e-24 : f32
    %90 = vector.broadcast %cst_13 : f32 to vector<2x2x16x1xf32>
    %91 = arith.maximumf %89, %90 : vector<2x2x16x1xf32>
    %92 = math.rsqrt %91 : vector<2x2x16x1xf32>
    %93 = vector.broadcast %92 : vector<2x2x16x1xf32> to vector<2x2x16x16xf32>
    %94 = arith.mulf %86, %93 : vector<2x2x16x16xf32>
    %95 = vector.broadcast %12 : vector<1x2x1x16xf32> to vector<2x2x16x16xf32>
    %96 = arith.mulf %94, %95 : vector<2x2x16x16xf32>
    %97 = vector.extract_strided_slice %76 {offsets = [0, 0, 0, 0], sizes = [2, 1, 16, 16], strides = [1, 1, 1, 1]} : vector<2x4x16x16xf32> to vector<2x1x16x16xf32>
    %98 = vector.shape_cast %97 : vector<2x1x16x16xf32> to vector<2x16x16xf32>
    %99 = vector.extract_strided_slice %76 {offsets = [0, 1, 0, 0], sizes = [2, 1, 16, 16], strides = [1, 1, 1, 1]} : vector<2x4x16x16xf32> to vector<2x1x16x16xf32>
    %100 = vector.shape_cast %99 : vector<2x1x16x16xf32> to vector<2x16x16xf32>
    %101 = tpu.concatenate %98, %100 in 1 : vector<2x16x16xf32>, vector<2x16x16xf32> -> vector<2x32x16xf32>
    %102 = vector.extract_strided_slice %76 {offsets = [0, 2, 0, 0], sizes = [2, 1, 16, 16], strides = [1, 1, 1, 1]} : vector<2x4x16x16xf32> to vector<2x1x16x16xf32>
    %103 = vector.shape_cast %102 : vector<2x1x16x16xf32> to vector<2x16x16xf32>
    %104 = vector.extract_strided_slice %76 {offsets = [0, 3, 0, 0], sizes = [2, 1, 16, 16], strides = [1, 1, 1, 1]} : vector<2x4x16x16xf32> to vector<2x1x16x16xf32>
    %105 = vector.shape_cast %104 : vector<2x1x16x16xf32> to vector<2x16x16xf32>
    %106 = tpu.concatenate %103, %105 in 1 : vector<2x16x16xf32>, vector<2x16x16xf32> -> vector<2x32x16xf32>
    %107 = vector.shape_cast %101 : vector<2x32x16xf32> to vector<2x1x32x16xf32>
    %108 = vector.shape_cast %106 : vector<2x32x16xf32> to vector<2x1x32x16xf32>
    %109 = tpu.concatenate %107, %108 in 1 : vector<2x1x32x16xf32>, vector<2x1x32x16xf32> -> vector<2x2x32x16xf32>
    %110 = vector.shape_cast %109 : vector<2x2x32x16xf32> to vector<4x32x16xf32>
    %111 = arith.truncf %110 : vector<4x32x16xf32> to vector<4x32x16xbf16>
    %112 = vector.shape_cast %96 : vector<2x2x16x16xf32> to vector<4x16x16xf32>
    %113 = arith.truncf %112 : vector<4x16x16xf32> to vector<4x16x16xbf16>
    %114 = vector.shape_cast %56 : vector<2x2x16x16xf32> to vector<4x16x16xf32>
    %115 = arith.truncf %114 : vector<4x16x16xf32> to vector<4x16x16xbf16>
    %cst_14 = arith.constant dense<0.000000e+00> : vector<4x32x16xf32>
    %116 = tpu.matmul %111, %113, %cst_14 {dimension_numbers = #tpu.dot_dimension_numbers<[2], [2], [1], [1], [0, 0, 0, 1, 1, 1], [0], [0]>} : vector<4x32x16xbf16>, vector<4x16x16xbf16>, vector<4x32x16xf32> -> vector<4x32x16xf32>
    %cst_15 = arith.constant dense<0xFF800000> : vector<4x32xf32>
    %117 = vector.multi_reduction <maximumf>, %116, %cst_15 [2] : vector<4x32x16xf32> to vector<4x32xf32>
    %118 = vector.shape_cast %117 : vector<4x32xf32> to vector<4x32x1xf32>
    %119 = vector.broadcast %118 : vector<4x32x1xf32> to vector<4x32x16xf32>
    %120 = arith.subf %116, %119 : vector<4x32x16xf32>
    %121 = math.exp %120 : vector<4x32x16xf32>
    %cst_16 = arith.constant dense<0.000000e+00> : vector<4x32xf32>
    %122 = vector.multi_reduction <add>, %121, %cst_16 [2] : vector<4x32x16xf32> to vector<4x32xf32>
    %123 = vector.shape_cast %122 : vector<4x32xf32> to vector<4x32x1xf32>
    %124 = tpu.reciprocal %123 {approx = true} : vector<4x32x1xf32> -> vector<4x32x1xf32>
    %125 = vector.broadcast %124 : vector<4x32x1xf32> to vector<4x32x16xf32>
    %126 = arith.mulf %121, %125 : vector<4x32x16xf32>
    %127 = arith.truncf %126 : vector<4x32x16xf32> to vector<4x32x16xbf16>
    %cst_17 = arith.constant dense<0.000000e+00> : vector<4x32x16xf32>
    %128 = tpu.matmul %127, %115, %cst_17 {dimension_numbers = #tpu.dot_dimension_numbers<[2], [1], [1], [2], [0, 0, 0, 1, 1, 2], [0], [0]>} : vector<4x32x16xbf16>, vector<4x16x16xbf16>, vector<4x32x16xf32> -> vector<4x32x16xf32>
    %129 = vector.shape_cast %128 : vector<4x32x16xf32> to vector<2x2x32x16xf32>
    %130 = vector.extract_strided_slice %129 {offsets = [0, 0, 0, 0], sizes = [2, 1, 16, 16], strides = [1, 1, 1, 1]} : vector<2x2x32x16xf32> to vector<2x1x16x16xf32>
    %131 = vector.shape_cast %130 : vector<2x1x16x16xf32> to vector<2x16x16xf32>
    %132 = vector.extract_strided_slice %129 {offsets = [0, 0, 16, 0], sizes = [2, 1, 16, 16], strides = [1, 1, 1, 1]} : vector<2x2x32x16xf32> to vector<2x1x16x16xf32>
    %133 = vector.shape_cast %132 : vector<2x1x16x16xf32> to vector<2x16x16xf32>
    %134 = vector.extract_strided_slice %129 {offsets = [0, 1, 0, 0], sizes = [2, 1, 16, 16], strides = [1, 1, 1, 1]} : vector<2x2x32x16xf32> to vector<2x1x16x16xf32>
    %135 = vector.shape_cast %134 : vector<2x1x16x16xf32> to vector<2x16x16xf32>
    %136 = vector.extract_strided_slice %129 {offsets = [0, 1, 16, 0], sizes = [2, 1, 16, 16], strides = [1, 1, 1, 1]} : vector<2x2x32x16xf32> to vector<2x1x16x16xf32>
    %137 = vector.shape_cast %136 : vector<2x1x16x16xf32> to vector<2x16x16xf32>
    %138 = tpu.concatenate %131, %133, %135, %137 in 2 : vector<2x16x16xf32>, vector<2x16x16xf32>, vector<2x16x16xf32>, vector<2x16x16xf32> -> vector<2x16x64xf32>
    %139 = vector.shape_cast %138 : vector<2x16x64xf32> to vector<32x64xf32>
    %140 = arith.truncf %139 : vector<32x64xf32> to vector<32x64xbf16>
    %c0_18 = arith.constant 0 : index
    %c0_19 = arith.constant 0 : index
    %141 = vector.load %arg3[%c0_18, %c0_19] : memref<64x64xbf16, #tpu.memory_space<vmem>>, vector<64x64xbf16>
    %cst_20 = arith.constant dense<0.000000e+00> : vector<32x64xf32>
    %142 = tpu.matmul %140, %141, %cst_20 {dimension_numbers = #tpu.dot_dimension_numbers<[1], [0], [0], [1], [0, 0, 1, 1], [], []>} : vector<32x64xbf16>, vector<64x64xbf16>, vector<32x64xf32> -> vector<32x64xf32>
    %143 = arith.addf %0, %142 : vector<32x64xf32>
    %144 = arith.mulf %143, %143 : vector<32x64xf32>
    %cst_21 = arith.constant dense<0.000000e+00> : vector<32xf32>
    %145 = vector.multi_reduction <add>, %144, %cst_21 [1] : vector<32x64xf32> to vector<32xf32>
    %146 = vector.shape_cast %145 : vector<32xf32> to vector<32x1xf32>
    %cst_22 = arith.constant 6.400000e+01 : f32
    %147 = vector.broadcast %cst_22 : f32 to vector<32x1xf32>
    %148 = arith.divf %146, %147 : vector<32x1xf32>
    %cst_23 = arith.constant 9.99999997E-7 : f32
    %149 = vector.broadcast %cst_23 : f32 to vector<32x1xf32>
    %150 = arith.addf %148, %149 : vector<32x1xf32>
    %151 = math.rsqrt %150 : vector<32x1xf32>
    %152 = vector.broadcast %151 : vector<32x1xf32> to vector<32x64xf32>
    %153 = arith.mulf %143, %152 : vector<32x64xf32>
    %154 = vector.broadcast %7 : vector<1x64xf32> to vector<32x64xf32>
    %155 = arith.mulf %153, %154 : vector<32x64xf32>
    %156 = arith.truncf %155 : vector<32x64xf32> to vector<32x64xbf16>
    %c0_24 = arith.constant 0 : index
    %c0_25 = arith.constant 0 : index
    %157 = vector.load %arg4[%c0_24, %c0_25] : memref<64x256xbf16, #tpu.memory_space<vmem>>, vector<64x256xbf16>
    %cst_26 = arith.constant dense<0.000000e+00> : vector<32x256xf32>
    %158 = tpu.matmul %156, %157, %cst_26 {dimension_numbers = #tpu.dot_dimension_numbers<[1], [0], [0], [1], [0, 0, 1, 1], [], []>} : vector<32x64xbf16>, vector<64x256xbf16>, vector<32x256xf32> -> vector<32x256xf32>
    %159 = vector.extract_strided_slice %158 {offsets = [0, 0], sizes = [32, 128], strides = [1, 1]} : vector<32x256xf32> to vector<32x128xf32>
    %160 = vector.extract_strided_slice %158 {offsets = [0, 128], sizes = [32, 128], strides = [1, 1]} : vector<32x256xf32> to vector<32x128xf32>
    %161 = arith.negf %159 : vector<32x128xf32>
    %162 = math.exp %161 : vector<32x128xf32>
    %cst_27 = arith.constant 1.000000e+00 : f32
    %163 = vector.broadcast %cst_27 : f32 to vector<32x128xf32>
    %164 = arith.addf %163, %162 : vector<32x128xf32>
    %165 = arith.divf %163, %164 : vector<32x128xf32>
    %166 = arith.mulf %159, %165 : vector<32x128xf32>
    %167 = arith.mulf %166, %160 : vector<32x128xf32>
    %168 = arith.truncf %167 : vector<32x128xf32> to vector<32x128xbf16>
    %c0_28 = arith.constant 0 : index
    %c0_29 = arith.constant 0 : index
    %169 = vector.load %arg5[%c0_28, %c0_29] : memref<128x64xbf16, #tpu.memory_space<vmem>>, vector<128x64xbf16>
    %cst_30 = arith.constant dense<0.000000e+00> : vector<32x64xf32>
    %170 = tpu.matmul %168, %169, %cst_30 {dimension_numbers = #tpu.dot_dimension_numbers<[1], [0], [0], [1], [0, 0, 1, 1], [], []>} : vector<32x128xbf16>, vector<128x64xbf16>, vector<32x64xf32> -> vector<32x64xf32>
    %171 = arith.addf %143, %170 : vector<32x64xf32>
    %c0_31 = arith.constant 0 : index
    %c0_32 = arith.constant 0 : index
    %172 = vector.load %arg6[%c0_31, %c0_32] : memref<32x64xf32, #tpu.memory_space<vmem>>, vector<32x64xf32>
    tpu.vector_store %arg6[%c0_31, %c0_32], %171 {strides = array<i32>} : memref<32x64xf32, #tpu.memory_space<vmem>>, vector<32x64xf32>,
    return
  }
}

</mosaic_0001>

<bundles_post_ra>
// kernel: tpu_custom_call.1
= control target key start
LH: loop header
LB: loop body
LE: loop exit
PB: predicated region body
PF: predicated region fallthrough
CT: control target
= control target key end

     0   :  { %11 = vsyncpa [#allocation3], 0  ;;  %s3500_s0 = inlined_call_operand.vmem [shape: f32[32,64], index: 0, kind: input, shape index: {}]   ;;  %s3501_s1 = inlined_call_operand.hbm [shape: f32[24,128], index: 1, kind: input, shape index: {}]   ;;  %s3502_s2 = inlined_call_operand.hbm [shape: bf16[64,128], index: 2, kind: input, shape index: {}]   ;;  %s3503_s3 = inlined_call_operand.hbm [shape: bf16[64,64], index: 3, kind: input, shape index: {}]   ;;  %s3504_s4 = inlined_call_operand.vmem [shape: bf16[64,256], index: 4, kind: input, shape index: {}]   ;;  %s3505_s5 = inlined_call_operand.vmem [shape: bf16[128,64], index: 5, kind: input, shape index: {}]   ;;  %s3506_s6 = inlined_call_operand.hbm [shape: f32[32,64], index: 6, kind: output, shape index: {}]  }
   0x1   :  { %12 = vsyncpa [#allocation6], 0 }
   0x2   :  { %13 = vsyncpa [#allocation4], 0  ;;  %s2537_s21 = smov [#allocation5]  }
   0x3   :  { %s33_s22 = sshll.u32 %s2537_s21, 4  ;;  %s34_s22 = int_to_ptr.vmem [resolvable:$true] %s33_s22 }
   0x4   :  { %s2459_s23 = scalar_lea.vmem %s34_s22, 512  ;;  %p2464_p1 = scmp.lt.s32.totalorder %s34_s22, %s34_s22 }
   0x5   :  { %p2460_p0 = scmp.ne.s32.totalorder %s34_s22, %s2459_s23  ;;  %p2465_p2 = scmp.lt.s32.totalorder %s2459_s23, %s2459_s23 }
   0x7   :  { %p2466_p3 = por %p2465_p2, %p2464_p1 }
   0x9   :  { %p2467_p4 = pnand %p2466_p3, %p2460_p0 }
   0xb   :  { %2470 = shalt.err (!%p2467_p4)
}
   0xc   :  { %s2538_s24 = smov 64   ;;  %s2539_s25 = smov 4  }
   0xd   :  { %39 = dma.hbm_to_vmem [thread:$0]  %s3502_s2, 512, %s34_s22, [#allocation6], %s2538_s24, %s2538_s24, %s2539_s25  }
   0xe   :  { %s2540_s28 = smov [#allocation2]  }
   0xf   :  { %s21_s29 = sshll.u32 %s2540_s28, 4  ;;  %s22_s29 = int_to_ptr.vmem [resolvable:$true] %s21_s29 }
  0x10   :  { %s2479_s30 = scalar_lea.vmem %s22_s29, 384  ;;  %p2484_p6 = scmp.lt.s32.totalorder %s22_s29, %s22_s29 }
  0x11   :  { %p2480_p5 = scmp.ne.s32.totalorder %s22_s29, %s2479_s30  ;;  %p2485_p7 = scmp.lt.s32.totalorder %s2479_s30, %s2479_s30 }
  0x13   :  { %p2486_p8 = por %p2485_p7, %p2484_p6 }
  0x15   :  { %p2487_p9 = pnand %p2486_p8, %p2480_p5 }
  0x17   :  { %2490 = shalt.err (!%p2487_p9)
}
  0x18   :  { %s2541_s7 = smov 128   ;;  %s2542_s8 = smov 8  }
  0x19   :  { %27 = dma.hbm_to_vmem [thread:$0]  %s3501_s1, 384, %s22_s29, [#allocation3], %s2541_s7, %s2541_s7, %s2542_s8  }
  0x1a   :  { %s2543_s2 = smov [#allocation7]  }
  0x1b   :  { %s45_s11 = sshll.u32 %s2543_s2, 4  ;;  %s46_s11 = int_to_ptr.vmem [resolvable:$true] %s45_s11 }
  0x1c   :  { %s2499_s12 = scalar_lea.vmem %s46_s11, 512  ;;  %p2504_p11 = scmp.lt.s32.totalorder %s46_s11, %s46_s11 }
  0x1d   :  { %p2500_p10 = scmp.ne.s32.totalorder %s46_s11, %s2499_s12  ;;  %p2505_p12 = scmp.lt.s32.totalorder %s2499_s12, %s2499_s12 }
  0x1f   :  { %p2506_p13 = por %p2505_p12, %p2504_p11 }
  0x21   :  { %p2507_p0 = pnand %p2506_p13, %p2500_p10 }
  0x23   :  { %2510 = shalt.err (!%p2507_p0)
}
  0x24   :  { %51 = dma.hbm_to_vmem [thread:$0]  %s3503_s3, 512, %s46_s11, [#allocation6], %s2538_s24, %s2538_s24, %s2539_s25  }
  0x25   :  { %2531 = dma.done.wait [#allocation3], 384  }
  0x26   :  { %2532 = vsyncadd [#allocation3], 4294966912 }
  0x27   :  { %2533 = dma.done.wait [#allocation6], 1024  }
  0x28   :  { %2534 = vsyncadd [#allocation6], 4294966272  ;;  %v68_v0 = vld [vmem:[%s3500_s0 + $0x10] sm:$0xff]  ;;  %vm127_vm0 = vcmask 523264   ;;  %v66_v1 = vld [vmem:[%s3500_s0] sm:$0xff]  ;;  %v78_v28 = vlaneseq  ;;  %s2544_s21 = smov 112  }
  0x29   :  { %v69_v2 = vld [vmem:[%s3500_s0 + $0x18] sm:$0xff]  ;;  %v125_v3 = vmul.f32 %v68_v0, %v68_v0  ;;  %v123_v4 = vmul.f32 %v66_v1, %v66_v1  ;;  %v67_v6 = vld [vmem:[%s3500_s0 + $0x8] sm:$0xff]  ;;  %v2274_v12 = vld [vmem:[#allocation5 + $0x18] sm:$0xff]   ;;  %s2545_s22 = smov 56   ;;  %s2546_s23 = smov 72   ;;  %vm426_vm1 = vcmask 64512  }
  0x2a   :  { %v126_v5 = vmul.f32 %v69_v2, %v69_v2  ;;  %v124_v7 = vmul.f32 %v67_v6, %v67_v6  ;;  %v2275_v13 = vld [vmem:[#allocation5 + $0x10] sm:$0xff]   ;;  %2129 = vmatprep.subr.bf16.mxu1 %v2274_v12  ;;  %v2276_v14 = vld [vmem:[#allocation5 + $0x8] sm:$0xff]   ;;  %v2277_v15 = vld [vmem:[#allocation5] sm:$0xff]   ;;  %v2623_v29 = vshrl.u32 %v78_v28, 7  ;;  %s2547_s25 = smov 96   ;;  %s2548_s26 = smov 80  }
  0x2b   :  { %v134_v8 = vsel %vm127_vm0, %v125_v3, 0.0  ;;  %v128_v9 = vsel %vm127_vm0, %v123_v4, 0.0  ;;  %2130 = vmatpush3.bf16.msra.mxu1 %v2274_v12  ;;  %v2628_v32 = vld [vmem:[#allocation2 + $0x10] sm:$0xff]  ;;  %v2659_v58 = vld [vmem:[#allocation2] sm:$0xff]  ;;  %v2663_v59 = vld [vmem:[#allocation2 + $0x8] sm:$0xff]  ;;  %s2549_s27 = smov 120  }
  0x2c   :  { %v137_v10 = vsel %vm127_vm0, %v126_v5, 0.0  ;;  %135 = vadd.xlane.f32.xlu1 %v134_v8  ;;  %129 = vadd.xlane.f32.xlu0 %v128_v9  ;;  %v131_v11 = vsel %vm127_vm0, %v124_v7, 0.0  ;;  %v2626_v30 = vsub.s32 0, %v2623_v29  ;;  %3511 = vst [vmem:[#allocation12_spill] sm:$0xff] %v2628_v32  ;;  %v177_v47 = vsub.s32 1, %v2623_v29  ;;  %s2551_s28 = smov 32  }
  0x2d   :  { %2131 = vmatprep.subr.bf16.mxu1 %v2275_v13  ;;  %vm515_vm2 = vcmask 130048   ;;  %s2552_s29 = smov 16   ;;  %s2553_s30 = smov 48   ;;  %vm1608_vm3 = vcmask 261120   ;;  %vm1613_vm4 = vcmask 392192  }
  0x2e   :  { %v2632_v34 = vrot.slane %v2628_v32, %v2626_v30  ;;  %v178_v49 = vrot.slane %v2628_v32, %v177_v47 }
  0x2f   :  { %2132 = vmatpush3.bf16.msra.mxu1 %v2275_v13 }
  0x30   :  { %138 = vadd.xlane.f32.xlu1 %v137_v10  ;;  %132 = vadd.xlane.f32.xlu0 %v131_v11  ;;  %3512 = vst [vmem:[#allocation13_spill] sm:$0xff] %v2632_v34 }
  0x31   :  { %2133 = vmatprep.subr.bf16.mxu1 %v2276_v14 }
  0x33   :  { %2134 = vmatpush3.bf16.msra.mxu1 %v2276_v14 }
  0x34   :  { %2135 = vmatprep.subr.bf16.mxu1 %v2277_v15 }
  0x37   :  { %2136 = vmatpush3.bf16.msra.mxu1 %v2277_v15 }
  0xb5   :  { %v136_v16 = vpop.xlane.xlu1 %135  ;;  %v130_v17 = vpop.xlane.xlu0 %129 }
  0xb6   :  { %v143_v18 = vmul.f32 0.015625, %v136_v16  ;;  %v141_v19 = vmul.f32 0.015625, %v130_v17 }
  0xb8   :  { %v147_v20 = vadd.f32 1e-06, %v143_v18  ;;  %v145_v21 = vadd.f32 1e-06, %v141_v19 }
  0xb9   :  { %v139_v22 = vpop.xlane.xlu1 %138  ;;  %v133_v23 = vpop.xlane.xlu0 %132 }
  0xba   :  { %2303 = vrsqrt.f32 %v147_v20  ;;  %v144_v24 = vmul.f32 0.015625, %v139_v22  ;;  %v142_v25 = vmul.f32 0.015625, %v133_v23 }
  0xbb   :  { %2305 = vrsqrt.f32 %v145_v21 }
  0xbc   :  { %v148_v26 = vadd.f32 1e-06, %v144_v24  ;;  %v146_v27 = vadd.f32 1e-06, %v142_v25 }
  0xbe   :  { %2307 = vrsqrt.f32 %v148_v26 }
  0xbf   :  { %2309 = vrsqrt.f32 %v146_v27 }
  0xc7   :  { %v2304_v31 = vpop.eup %2303 }
  0xc8   :  { %v2306_v33 = vpop.eup %2305  ;;  %v155_v35 = vmul.f32 %v2304_v31, %v68_v0 }
  0xc9   :  { %v153_v37 = vmul.f32 %v2306_v33, %v66_v1 }
  0xca   :  { %v163_v41 = vmul.f32 %v2632_v34, %v155_v35 }
  0xcb   :  { %v2308_v36 = vpop.eup %2307  ;;  %v161_v43 = vmul.f32 %v2632_v34, %v153_v37 }
  0xcc   :  { %v2310_v38 = vpop.eup %2309  ;;  %v156_v39 = vmul.f32 %v2308_v36, %v69_v2 }
  0xcd   :  { %v154_v40 = vmul.f32 %v2310_v38, %v67_v6 }
  0xce   :  { %v164_v42 = vmul.f32 %v2632_v34, %v156_v39 }
  0xcf   :  { %v162_v44 = vmul.f32 %v2632_v34, %v154_v40 }
  0xd0   :  { %v166_v45 = vpack.c.bf16 %v164_v42, %v163_v41 }
  0xd1   :  { %v165_v46 = vpack.c.bf16 %v162_v44, %v161_v43 }
  0xd3   :  { %2137 = vmatprep.mubr.msk.bf16.mxu1 %vm127_vm0, %v165_v46 }
  0xd4   :  { %2138 = vmatmul.mubr.msk.bf16.vlgmr.msra.gmra.mxu1 %vm127_vm0, %v166_v45 }
 0x194   :  { %v2139_v48 = vpop.f32.mrf.mxu1 }
 0x195   :  { %v2652_v56 = vadd.f32 %v2139_v48, %v178_v49 }
 0x196   :  { %v243_v50 = vpop.f32.mrf.mxu1 }
 0x197   :  { %v2642_v51 = vadd.f32 %v243_v50, %v178_v49  ;;  %v306_v6 = vsub.f32 0.0, %v2652_v56 }
 0x198   :  { %v2140_v52 = vpop.f32.mrf.mxu1 }
 0x199   :  { %262 = vrot.lane.b32.xlu0 %v2642_v51, %s2544_s21  ;;  %v298_v55 = vsub.f32 0.0, %v2642_v51  ;;  %v2657_v57 = vadd.f32 %v2140_v52, %v178_v49 }
 0x19a   :  { %v246_v53 = vpop.f32.mrf.mxu1 }
 0x19b   :  { %v2645_v54 = vadd.f32 %v246_v53, %v178_v49  ;;  %v307_v7 = vsub.f32 0.0, %v2657_v57 }
 0x19d   :  { %264 = vrot.lane.b32.xlu1 %v2645_v54, %s2544_s21  ;;  %648 = vrot.lane.b32.xlu0 %v298_v55, %s2545_s22  ;;  %v299_v60 = vsub.f32 0.0, %v2645_v54 }
 0x1a1   :  { %266 = vrot.lane.b32.xlu1 %v2652_v56, %s2544_s21  ;;  %672 = vrot.lane.b32.xlu0 %v2642_v51, %s2546_s23 }
 0x1a5   :  { %268 = vrot.lane.b32.xlu1 %v2657_v57, %s2544_s21  ;;  %461 = vrot.lane.b32.xlu0 %v2659_v58, %s2544_s21 }
 0x1a9   :  { %463 = vrot.lane.b32.xlu1 %v2663_v59, %s2544_s21 }
 0x1ad   :  { %674 = vrot.lane.b32.xlu1 %v2645_v54, %s2546_s23 }
 0x1b1   :  { %650 = vrot.lane.b32.xlu1 %v299_v60, %s2545_s22 }
 0x20b   :  { %v2678_v63 = vpop.permute.xlu0 %262 }
 0x20c   :  { %v300_v4 = vsub.f32 0.0, %v2678_v63 }
 0x20f   :  { %v2670_v61 = vpop.permute.xlu1 %264  ;;  %v649_v5 = vpop.permute.xlu0 %648 }
 0x210   :  { %678 = vrot.lane.b32.xlu1 %v2670_v61, %s2546_s23  ;;  %v301_v3 = vsub.f32 0.0, %v2670_v61 }
 0x213   :  { %v2674_v62 = vpop.permute.xlu1 %266  ;;  %v673_v8 = vpop.permute.xlu0 %672 }
 0x214   :  { %684 = vrot.lane.b32.xlu0 %v2674_v62, %s2546_s23  ;;  %v3507_v2 = vsub.f32 0.0, %v2674_v62  ;;  %v696_v10 = vsel %vm426_vm1, %v649_v5, %v673_v8 }
 0x217   :  { %v2680_v0 = vpop.permute.xlu1 %268  ;;  %v2714_v9 = vpop.permute.xlu0 %461 }
 0x218   :  { %676 = vrot.lane.b32.xlu0 %v2678_v63, %s2546_s23  ;;  %v309_v1 = vsub.f32 0.0, %v2680_v0  ;;  %v718_v11 = vmul.f32 %v696_v10, %v2714_v9 }
 0x21a   :  { %662 = vrot.lane.b32.xlu1 %v309_v1, %s2545_s22 }
 0x21b   :  { %v2734_v12 = vpop.permute.xlu1 %463 }
 0x21c   :  { %660 = vrot.lane.b32.xlu0 %v3507_v2, %s2545_s22 }
 0x21e   :  { %654 = vrot.lane.b32.xlu1 %v301_v3, %s2545_s22 }
 0x21f   :  { %v675_v13 = vpop.permute.xlu1 %674 }
 0x220   :  { %652 = vrot.lane.b32.xlu0 %v300_v4, %s2545_s22 }
 0x222   :  { %686 = vrot.lane.b32.xlu1 %v2680_v0, %s2546_s23 }
 0x223   :  { %v651_v14 = vpop.permute.xlu1 %650 }
 0x224   :  { %656 = vrot.lane.b32.xlu0 %v306_v6, %s2545_s22  ;;  %v697_v35 = vsel %vm426_vm1, %v651_v14, %v675_v13 }
 0x225   :  { %v719_v36 = vmul.f32 %v697_v35, %v2734_v12 }
 0x226   :  { %658 = vrot.lane.b32.xlu1 %v307_v7, %s2545_s22 }
 0x228   :  { %680 = vrot.lane.b32.xlu0 %v2652_v56, %s2546_s23 }
 0x22a   :  { %682 = vrot.lane.b32.xlu1 %v2657_v57, %s2546_s23 }
 0x22c   :  { %704 = vrot.lane.b32.xlu0 %v2659_v58, %s2538_s24 }
 0x22e   :  { %706 = vrot.lane.b32.xlu1 %v2663_v59, %s2538_s24 }
 0x230   :  { %734 = vrot.lane.b32.xlu0 %v718_v11, %s2538_s24 }
 0x232   :  { %276 = vrot.lane.b32.xlu1 %v2645_v54, %s2547_s25 }
 0x236   :  { %288 = vrot.lane.b32.xlu1 %v2645_v54, %s2548_s26 }
 0x23a   :  { %280 = vrot.lane.b32.xlu1 %v2657_v57, %s2547_s25 }
 0x23e   :  { %292 = vrot.lane.b32.xlu1 %v2657_v57, %s2548_s26 }
 0x242   :  { %332 = vrot.lane.b32.xlu1 %v299_v60, %s2549_s27 }
 0x246   :  { %380 = vrot.lane.b32.xlu1 %v2645_v54, %s2542_s8 }
 0x282   :  { %v679_v16 = vpop.permute.xlu1 %678 }
 0x286   :  { %v685_v15 = vpop.permute.xlu0 %684 }
 0x28a   :  { %v677_v17 = vpop.permute.xlu0 %676 }
 0x28c   :  { %v663_v18 = vpop.permute.xlu1 %662 }
 0x28e   :  { %v661_v19 = vpop.permute.xlu0 %660 }
 0x28f   :  { %v702_v44 = vsel %vm426_vm1, %v661_v19, %v685_v15 }
 0x290   :  { %v655_v20 = vpop.permute.xlu1 %654  ;;  %v724_v46 = vmul.f32 %v702_v44, %v2714_v9 }
 0x291   :  { %v699_v39 = vsel %vm426_vm1, %v655_v20, %v679_v16 }
 0x292   :  { %v653_v21 = vpop.permute.xlu0 %652  ;;  %v721_v40 = vmul.f32 %v699_v39, %v2734_v12 }
 0x293   :  { %v698_v47 = vsel %vm426_vm1, %v653_v21, %v677_v17 }
 0x294   :  { %v687_v22 = vpop.permute.xlu1 %686  ;;  %v720_v49 = vmul.f32 %v698_v47, %v2714_v9 }
 0x295   :  { %v703_v37 = vsel %vm426_vm1, %v663_v18, %v687_v22 }
 0x296   :  { %v657_v23 = vpop.permute.xlu0 %656  ;;  %v725_v38 = vmul.f32 %v703_v37, %v2734_v12 }
 0x298   :  { %v659_v24 = vpop.permute.xlu1 %658 }
 0x29a   :  { %v681_v25 = vpop.permute.xlu0 %680 }
 0x29b   :  { %v700_v26 = vsel %vm426_vm1, %v657_v23, %v681_v25 }
 0x29c   :  { %v683_v27 = vpop.permute.xlu1 %682  ;;  %v722_v28 = vmul.f32 %v700_v26, %v2714_v9 }
 0x29d   :  { %v701_v31 = vsel %vm426_vm1, %v659_v24, %v683_v27 }
 0x29e   :  { %742 = vrot.lane.b32.xlu0 %v722_v28, %s2538_s24  ;;  %v723_v33 = vmul.f32 %v701_v31, %v2734_v12  ;;  %v2805_v60 = vpop.permute.xlu0 %704 }
 0x29f   :  { %v714_v8 = vmul.f32 %v2805_v60, %v2652_v56 }
 0x2a0   :  { %744 = vrot.lane.b32.xlu1 %v723_v33, %s2538_s24  ;;  %v707_v41 = vpop.permute.xlu1 %706 }
 0x2a1   :  { %v711_v17 = vmul.f32 %v707_v41, %v2645_v54  ;;  %v717_v21 = vmul.f32 %v707_v41, %v2680_v0  ;;  %v713_v27 = vmul.f32 %v707_v41, %v2670_v61 }
 0x2a2   :  { %274 = vrot.lane.b32.xlu0 %v2642_v51, %s2547_s25 }
 0x2a4   :  { %736 = vrot.lane.b32.xlu1 %v719_v36, %s2538_s24  ;;  %v2765_v42 = vpop.permute.xlu1 %276 }
 0x2a5   :  { %v303_v43 = vsub.f32 0.0, %v2765_v42 }
 0x2a6   :  { %286 = vrot.lane.b32.xlu0 %v2642_v51, %s2548_s26 }
 0x2a8   :  { %748 = vrot.lane.b32.xlu1 %v725_v38, %s2538_s24  ;;  %v2777_v45 = vpop.permute.xlu1 %288 }
 0x2a9   :  { %v305_v48 = vsub.f32 0.0, %v2777_v45 }
 0x2aa   :  { %278 = vrot.lane.b32.xlu0 %v2652_v56, %s2547_s25 }
 0x2ac   :  { %740 = vrot.lane.b32.xlu1 %v721_v40, %s2538_s24  ;;  %v2788_v50 = vpop.permute.xlu1 %280 }
 0x2ad   :  { %v311_v52 = vsub.f32 0.0, %v2788_v50 }
 0x2ae   :  { %290 = vrot.lane.b32.xlu0 %v2652_v56, %s2548_s26 }
 0x2b0   :  { %336 = vrot.lane.b32.xlu1 %v301_v3, %s2549_s27  ;;  %v2796_v53 = vpop.permute.xlu1 %292 }
 0x2b2   :  { %330 = vrot.lane.b32.xlu0 %v298_v55, %s2549_s27  ;;  %v313_v55 = vsub.f32 0.0, %v2796_v53 }
 0x2b4   :  { %384 = vrot.lane.b32.xlu1 %v2670_v61, %s2542_s8  ;;  %v2807_v3 = vpop.permute.xlu1 %332 }
 0x2b6   :  { %378 = vrot.lane.b32.xlu0 %v2642_v51, %s2542_s8 }
 0x2b8   :  { %340 = vrot.lane.b32.xlu1 %v303_v43, %s2549_s27  ;;  %v2809_v5 = vpop.permute.xlu1 %380 }
 0x2ba   :  { %334 = vrot.lane.b32.xlu0 %v300_v4, %s2549_s27  ;;  %v735_v4 = vpop.permute.xlu0 %734 }
 0x2bc   :  { %388 = vrot.lane.b32.xlu1 %v2765_v42, %s2542_s8 }
 0x2be   :  { %746 = vrot.lane.b32.xlu0 %v724_v46, %s2538_s24 }
 0x2c0   :  { %344 = vrot.lane.b32.xlu1 %v305_v48, %s2549_s27 }
 0x2c2   :  { %738 = vrot.lane.b32.xlu0 %v720_v49, %s2538_s24 }
 0x2c4   :  { %392 = vrot.lane.b32.xlu1 %v2777_v45, %s2542_s8 }
 0x2c8   :  { %356 = vrot.lane.b32.xlu1 %v311_v52, %s2549_s27 }
 0x2cc   :  { %404 = vrot.lane.b32.xlu1 %v2788_v50, %s2542_s8 }
 0x2d0   :  { %348 = vrot.lane.b32.xlu1 %v307_v7, %s2549_s27  ;;  %v715_v7 = vmul.f32 %v707_v41, %v2657_v57 }
 0x2d4   :  { %360 = vrot.lane.b32.xlu1 %v313_v55, %s2549_s27 }
 0x2d8   :  { %396 = vrot.lane.b32.xlu1 %v2657_v57, %s2542_s8 }
 0x310   :  { %v743_v10 = vpop.permute.xlu0 %742 }
 0x311   :  { %v2813_v11 = vadd.f32 %v743_v10, %v714_v8  ;;  %v710_v8 = vmul.f32 %v2805_v60, %v2642_v51 }
 0x312   :  { %v745_v13 = vpop.permute.xlu1 %744 }
 0x313   :  { %v2816_v14 = vadd.f32 %v745_v13, %v715_v7  ;;  %v770_v15 = vmul.f32 %v2813_v11, %v2813_v11  ;;  %v2898_v13 = vadd.f32 %v735_v4, %v710_v8  ;;  %v712_v4 = vmul.f32 %v2805_v60, %v2678_v63 }
 0x314   :  { %v2820_v16 = vpop.permute.xlu0 %274 }
 0x315   :  { %790 = vrot.lane.b32.xlu0 %v770_v15, %s2538_s24  ;;  %v771_v18 = vmul.f32 %v2816_v14, %v2816_v14  ;;  %v302_v26 = vsub.f32 0.0, %v2820_v16  ;;  %v716_v15 = vmul.f32 %v2805_v60, %v2674_v62 }
 0x316   :  { %v737_v19 = vpop.permute.xlu1 %736 }
 0x317   :  { %v2826_v20 = vadd.f32 %v737_v19, %v711_v17  ;;  %792 = vrot.lane.b32.xlu1 %v771_v18, %s2538_s24  ;;  %v766_v19 = vmul.f32 %v2898_v13, %v2898_v13 }
 0x318   :  { %v2834_v23 = vpop.permute.xlu0 %286 }
 0x319   :  { %382 = vrot.lane.b32.xlu0 %v2678_v63, %s2542_s8  ;;  %v767_v22 = vmul.f32 %v2826_v20, %v2826_v20  ;;  %v304_v38 = vsub.f32 0.0, %v2834_v23 }
 0x31a   :  { %v749_v24 = vpop.permute.xlu1 %748 }
 0x31b   :  { %v2836_v25 = vadd.f32 %v749_v24, %v717_v21  ;;  %784 = vrot.lane.b32.xlu1 %v767_v22, %s2538_s24 }
 0x31c   :  { %v2847_v35 = vpop.permute.xlu0 %278 }
 0x31d   :  { %338 = vrot.lane.b32.xlu0 %v302_v26, %s2549_s27  ;;  %v773_v28 = vmul.f32 %v2836_v25, %v2836_v25  ;;  %v310_v43 = vsub.f32 0.0, %v2847_v35 }
 0x31e   :  { %v741_v31 = vpop.permute.xlu1 %740 }
 0x31f   :  { %v2844_v33 = vadd.f32 %v741_v31, %v713_v27  ;;  %796 = vrot.lane.b32.xlu1 %v773_v28, %s2538_s24 }
 0x320   :  { %v2858_v39 = vpop.permute.xlu0 %290 }
 0x321   :  { %386 = vrot.lane.b32.xlu0 %v2820_v16, %s2542_s8  ;;  %v769_v36 = vmul.f32 %v2844_v33, %v2844_v33  ;;  %v312_v49 = vsub.f32 0.0, %v2858_v39 }
 0x322   :  { %v2853_v37 = vpop.permute.xlu1 %336 }
 0x323   :  { %788 = vrot.lane.b32.xlu1 %v769_v36, %s2538_s24  ;;  %v2550_v36 = vmov 1966171168  }
 0x324   :  { %v2872_v44 = vpop.permute.xlu0 %330 }
 0x325   :  { %342 = vrot.lane.b32.xlu0 %v304_v38, %s2549_s27  ;;  %v76_v38 = vunpack.c.l.s4 %v2550_v36 }
 0x326   :  { %v2860_v40 = vpop.permute.xlu1 %384 }
 0x327   :  { %408 = vrot.lane.b32.xlu1 %v2796_v53, %s2542_s8  ;;  %v77_v8 = vunpack.c.0.s8 %v76_v38 }
 0x328   :  { %v2881_v47 = vpop.permute.xlu0 %378 }
 0x329   :  { %390 = vrot.lane.b32.xlu0 %v2834_v23, %s2542_s8 }
 0x32a   :  { %v2866_v41 = vpop.permute.xlu1 %340 }
 0x32b   :  { %352 = vrot.lane.b32.xlu1 %v309_v1, %s2549_s27 }
 0x32c   :  { %v2891_v52 = vpop.permute.xlu0 %334 }
 0x32d   :  { %354 = vrot.lane.b32.xlu0 %v310_v43, %s2549_s27 }
 0x32e   :  { %v2875_v46 = vpop.permute.xlu1 %388 }
 0x32f   :  { %400 = vrot.lane.b32.xlu1 %v2680_v0, %s2542_s8 }
 0x330   :  { %v747_v10 = vpop.permute.xlu0 %746 }
 0x331   :  { %402 = vrot.lane.b32.xlu0 %v2847_v35, %s2542_s8  ;;  %v2907_v18 = vadd.f32 %v747_v10, %v716_v15 }
 0x332   :  { %v2883_v48 = vpop.permute.xlu1 %344 }
 0x333   :  { %v772_v26 = vmul.f32 %v2907_v18, %v2907_v18 }
 0x334   :  { %v739_v21 = vpop.permute.xlu0 %738 }
 0x335   :  { %346 = vrot.lane.b32.xlu0 %v306_v6, %s2549_s27  ;;  %v2916_v24 = vadd.f32 %v739_v21, %v712_v4 }
 0x336   :  { %v2888_v1 = vpop.permute.xlu1 %392 }
 0x337   :  { %v768_v31 = vmul.f32 %v2916_v24, %v2916_v24 }
 0x339   :  { %358 = vrot.lane.b32.xlu0 %v312_v49, %s2549_s27 }
 0x33a   :  { %v357_v55 = vpop.permute.xlu1 %356 }
 0x33d   :  { %394 = vrot.lane.b32.xlu0 %v2652_v56, %s2542_s8 }
 0x33e   :  { %v405_v7 = vpop.permute.xlu1 %404 }
 0x33f   :  { %v2901_v6 = vsel %vm426_vm1, %v357_v55, %v405_v7 }
 0x341   :  { %406 = vrot.lane.b32.xlu0 %v2858_v39, %s2542_s8 }
 0x342   :  { %v349_v17 = vpop.permute.xlu1 %348 }
 0x345   :  { %782 = vrot.lane.b32.xlu0 %v766_v19, %s2538_s24  ;;  %v2938_v19 = vsub.s32 %v77_v8, %v2623_v29 }
 0x346   :  { %v2914_v22 = vpop.permute.xlu1 %360 }
 0x349   :  { %794 = vrot.lane.b32.xlu0 %v772_v26, %s2538_s24 }
 0x34a   :  { %v397_v27 = vpop.permute.xlu1 %396 }
 0x34b   :  { %v2922_v28 = vsel %vm426_vm1, %v349_v17, %v397_v27  ;;  %v74_v17 = vcombine.high %v2628_v32, %v2628_v32 }
 0x34d   :  { %786 = vrot.lane.b32.xlu0 %v768_v31, %s2538_s24  ;;  %v2944_v27 = vrot.slane %v74_v17, %v2938_v19 }
 0x387   :  { %v2927_v60 = vpop.permute.xlu0 %790 }
 0x389   :  { %v793_v43 = vpop.permute.xlu1 %792 }
 0x38a   :  { %v821_v49 = vsel %vm515_vm2, %v793_v43, 0.0  ;;  %v90_v43 = vcombine.high %v2944_v27, %v2944_v27 }
 0x38b   :  { %822 = vadd.xlane.f32.xlu1 %v821_v49  ;;  %v2930_v55 = vpop.permute.xlu0 %382 }
 0x38c   :  { %v2954_v49 = vrot.slane %v90_v43, %v2938_v19 }
 0x38d   :  { %v785_v10 = vpop.permute.xlu1 %784 }
 0x38e   :  { %v809_v7 = vsel %vm515_vm2, %v785_v10, 0.0  ;;  %3513 = vst [vmem:[#allocation14_spill] sm:$0xff] %v2954_v49  ;;  %v122_v10 = vcombine.high %v2954_v49, %v2954_v49 }
 0x38f   :  { %810 = vadd.xlane.f32.xlu1 %v809_v7  ;;  %v2933_v15 = vpop.permute.xlu0 %338 }
 0x390   :  { %v861_v17 = vrot.slane %v122_v10, %v2626_v30  ;;  %v428_v10 = vsel %vm426_vm1, %v2807_v3, %v2809_v5 }
 0x391   :  { %v797_v21 = vpop.permute.xlu1 %796  ;;  %v468_v49 = vmul.f32 %v2734_v12, %v428_v10  ;;  %v480_v10 = vmul.f32 %v2734_v12, %v2901_v6 }
 0x392   :  { %v827_v4 = vsel %vm515_vm2, %v797_v21, 0.0 }
 0x393   :  { %828 = vadd.xlane.f32.xlu1 %v827_v4  ;;  %v2941_v26 = vpop.permute.xlu0 %386 }
 0x395   :  { %v789_v31 = vpop.permute.xlu1 %788 }
 0x396   :  { %v815_v36 = vsel %vm515_vm2, %v789_v31, 0.0 }
 0x397   :  { %816 = vadd.xlane.f32.xlu1 %v815_v36  ;;  %v2947_v38 = vpop.permute.xlu0 %342 }
 0x399   :  { %v409_v3 = vpop.permute.xlu1 %408 }
 0x39b   :  { %v2951_v29 = vpop.permute.xlu0 %390 }
 0x39f   :  { %v2956_v8 = vpop.permute.xlu0 %354 }
 0x3a3   :  { %v2960_v7 = vpop.permute.xlu0 %402 }
 0x3a7   :  { %v347_v21 = vpop.permute.xlu0 %346 }
 0x3a8   :  { %864 = vrot.lane.b32.xlu1 %v861_v17, %s2538_s24  ;;  %v432_v17 = vsel %vm426_vm1, %v2866_v41, %v2875_v46  ;;  %v450_v46 = vmul.f32 %v2777_v45, %v2663_v59  ;;  %v476_v45 = vmul.f32 %v2734_v12, %v2922_v28 }
 0x3ab   :  { %v359_v4 = vpop.permute.xlu0 %358 }
 0x3af   :  { %v395_v31 = vpop.permute.xlu0 %394 }
 0x3b0   :  { %v2965_v36 = vsel %vm426_vm1, %v347_v21, %v395_v31  ;;  %v444_v21 = vmul.f32 %v2645_v54, %v2663_v59 }
 0x3b3   :  { %v407_v2 = vpop.permute.xlu0 %406 }
 0x3b4   :  { %v2968_v43 = vsel %vm426_vm1, %v359_v4, %v407_v2  ;;  %v472_v2 = vmul.f32 %v2734_v12, %v432_v17  ;;  %v2981_v4 = vadd.f32 %v468_v49, %v444_v21  ;;  %v456_v17 = vmul.f32 %v2788_v50, %v2663_v59 }
 0x3b5   :  { %v452_v50 = vmul.f32 %v2657_v57, %v2663_v59 }
 0x3b6   :  { %v500_v41 = vmul.f32 %v2981_v4, %v2981_v4  ;;  %v3004_v21 = vadd.f32 %v480_v10, %v456_v17 }
 0x3b7   :  { %v783_v34 = vpop.permute.xlu0 %782 }
 0x3b8   :  { %v806_v32 = vsel %vm515_vm2, %v783_v34, 0.0  ;;  %v448_v34 = vmul.f32 %v2765_v42, %v2663_v59  ;;  %v512_v10 = vmul.f32 %v3004_v21, %v3004_v21 }
 0x3b9   :  { %807 = vadd.xlane.f32.xlu0 %v806_v32  ;;  %v434_v32 = vsel %vm426_vm1, %v2883_v48, %v2888_v1  ;;  %v353_v48 = vpop.permute.xlu1 %352  ;;  %v519_v1 = vsel %vm515_vm2, %v500_v41, 0.0  ;;  %v3018_v41 = vadd.f32 %v476_v45, %v452_v50 }
 0x3ba   :  { %v2988_v5 = vadd.f32 %v472_v2, %v448_v34  ;;  %v474_v31 = vmul.f32 %v2734_v12, %v434_v32  ;;  %v3514_v2 = vsub.f32 0.0, %v2674_v62  ;;  %v442_v34 = vsel %vm426_vm1, %v2914_v22, %v409_v3 }
 0x3bb   :  { %v482_v28 = vmul.f32 %v2734_v12, %v442_v34  ;;  %v458_v22 = vmul.f32 %v2796_v53, %v2663_v59  ;;  %v555_v17 = vsel %vm515_vm2, %v512_v10, 0.0  ;;  %v508_v45 = vmul.f32 %v3018_v41, %v3018_v41 }
 0x3bc   :  { %v2995_v49 = vadd.f32 %v474_v31, %v450_v46  ;;  %v504_v42 = vmul.f32 %v2988_v5, %v2988_v5 }
 0x3bd   :  { %v401_v31 = vpop.permute.xlu1 %400  ;;  %v3029_v3 = vadd.f32 %v482_v28, %v458_v22  ;;  %v818_v28 = vsel %vm515_vm2, %v2927_v60, 0.0  ;;  %v3052_v22 = vrot.slane %v2944_v27, %v2938_v19  ;;  %v427_v60 = vsel %vm426_vm1, %v2872_v44, %v2881_v47 }
 0x3be   :  { %v531_v6 = vsel %vm515_vm2, %v504_v42, 0.0  ;;  %v506_v32 = vmul.f32 %v2995_v49, %v2995_v49  ;;  %v443_v27 = vmul.f32 %v2642_v51, %v2659_v58  ;;  %v445_v44 = vmul.f32 %v2678_v63, %v2659_v58 }
 0x3bf   :  { %v514_v53 = vmul.f32 %v3029_v3, %v3029_v3 }
 0x3c0   :  { %v537_v46 = vsel %vm515_vm2, %v506_v32, 0.0 }
 0x3c1   :  { %v561_v32 = vsel %vm515_vm2, %v514_v53, 0.0 }
 0x3cc   :  { %520 = vadd.xlane.f32.xlu1 %v519_v1  ;;  %v438_v1 = vsel %vm426_vm1, %v353_v48, %v401_v31  ;;  %v543_v48 = vsel %vm515_vm2, %v508_v45, 0.0  ;;  %v795_v31 = vpop.permute.xlu0 %794  ;;  %v467_v45 = vmul.f32 %v2714_v9, %v427_v60  ;;  %v455_v60 = vmul.f32 %v2847_v35, %v2659_v58 }
 0x3cd   :  { %v478_v42 = vmul.f32 %v2734_v12, %v438_v1 }
 0x3ce   :  { %v3068_v53 = vadd.f32 %v467_v45, %v443_v27 }
 0x3cf   :  { %350 = vrot.lane.b32.xlu0 %v3514_v2, %s2549_s27  ;;  %v454_v2 = vmul.f32 %v2680_v0, %v2663_v59 }
 0x3d0   :  { %532 = vadd.xlane.f32.xlu1 %v531_v6  ;;  %v787_v10 = vpop.permute.xlu0 %786 }
 0x3d1   :  { %v3037_v6 = vadd.f32 %v478_v42, %v454_v2  ;;  %v812_v1 = vsel %vm515_vm2, %v787_v10, 0.0  ;;  %v121_v42 = vcombine.high %v3052_v22, %v3052_v22  ;;  %v429_v2 = vsel %vm426_vm1, %v2891_v52, %v2930_v55 }
 0x3d2   :  { %v431_v55 = vsel %vm426_vm1, %v2933_v15, %v2941_v26  ;;  %v447_v15 = vmul.f32 %v2820_v16, %v2659_v58 }
 0x3d3   :  { %398 = vrot.lane.b32.xlu0 %v2674_v62, %s2542_s8  ;;  %v510_v34 = vmul.f32 %v3037_v6, %v3037_v6 }
 0x3d4   :  { %538 = vadd.xlane.f32.xlu1 %v537_v46  ;;  %v824_v46 = vsel %vm515_vm2, %v795_v31, 0.0  ;;  %v471_v31 = vmul.f32 %v2714_v9, %v431_v55 }
 0x3d5   :  { %v549_v50 = vsel %vm515_vm2, %v510_v34, 0.0  ;;  %v499_v34 = vmul.f32 %v3068_v53, %v3068_v53 }
 0x3d6   :  { %v3096_v26 = vadd.f32 %v471_v31, %v447_v15 }
 0x3d8   :  { %556 = vadd.xlane.f32.xlu1 %v555_v17  ;;  %v857_v17 = vrot.slane %v121_v42, %v2626_v30 }
 0x3dc   :  { %544 = vadd.xlane.f32.xlu1 %v543_v48  ;;  %v469_v48 = vmul.f32 %v2714_v9, %v429_v2  ;;  %v451_v2 = vmul.f32 %v2652_v56, %v2659_v58 }
 0x3de   :  { %v3078_v52 = vadd.f32 %v469_v48, %v445_v44  ;;  %v481_v48 = vmul.f32 %v2714_v9, %v2968_v43 }
 0x3e0   :  { %562 = vadd.xlane.f32.xlu1 %v561_v32  ;;  %v430_v32 = vsel %vm426_vm1, %v2853_v37, %v2860_v40  ;;  %v516_v37 = vsel %vm515_vm2, %v499_v34, 0.0  ;;  %v501_v40 = vmul.f32 %v3078_v52, %v3078_v52 }
 0x3e1   :  { %v470_v47 = vmul.f32 %v2734_v12, %v430_v32 }
 0x3e4   :  { %550 = vadd.xlane.f32.xlu1 %v549_v50  ;;  %v446_v50 = vmul.f32 %v2670_v61, %v2663_v59 }
 0x3e6   :  { %v3089_v12 = vadd.f32 %v470_v47, %v446_v50 }
 0x3e8   :  { %v502_v10 = vmul.f32 %v3089_v12, %v3089_v12 }
 0x3ea   :  { %v525_v42 = vsel %vm515_vm2, %v502_v10, 0.0 }
 0x3f2   :  { %819 = vadd.xlane.f32.xlu0 %v818_v28  ;;  %v433_v28 = vsel %vm426_vm1, %v2947_v38, %v2951_v29  ;;  %v449_v38 = vmul.f32 %v2834_v23, %v2659_v58 }
 0x3f3   :  { %v473_v59 = vmul.f32 %v2714_v9, %v433_v28  ;;  %v453_v28 = vmul.f32 %v2674_v62, %v2659_v58 }
 0x3f5   :  { %v3107_v29 = vadd.f32 %v473_v59, %v449_v38 }
 0x3f6   :  { %825 = vadd.xlane.f32.xlu0 %v824_v46  ;;  %v522_v46 = vsel %vm515_vm2, %v501_v40, 0.0 }
 0x3fa   :  { %813 = vadd.xlane.f32.xlu0 %v812_v1  ;;  %v439_v1 = vsel %vm426_vm1, %v2956_v8, %v2960_v7  ;;  %v475_v8 = vmul.f32 %v2714_v9, %v2965_v36  ;;  %v505_v7 = vmul.f32 %v3107_v29, %v3107_v29  ;;  %v457_v36 = vmul.f32 %v2858_v39, %v2659_v58 }
 0x3fb   :  { %v479_v16 = vmul.f32 %v2714_v9, %v439_v1 }
 0x3fc   :  { %v3124_v27 = vadd.f32 %v475_v8, %v451_v2  ;;  %v534_v35 = vsel %vm515_vm2, %v505_v7, 0.0  ;;  %v3133_v44 = vadd.f32 %v481_v48, %v457_v36 }
 0x3fd   :  { %v3115_v45 = vadd.f32 %v479_v16, %v455_v60 }
 0x3fe   :  { %v507_v55 = vmul.f32 %v3124_v27, %v3124_v27  ;;  %v513_v31 = vmul.f32 %v3133_v44, %v3133_v44 }
 0x3ff   :  { %v511_v32 = vmul.f32 %v3115_v45, %v3115_v45 }
 0x400   :  { %v540_v43 = vsel %vm515_vm2, %v507_v55, 0.0  ;;  %v558_v40 = vsel %vm515_vm2, %v513_v31, 0.0 }
 0x401   :  { %v552_v34 = vsel %vm515_vm2, %v511_v32, 0.0 }
 0x410   :  { %862 = vrot.lane.b32.xlu0 %v857_v17, %s2538_s24  ;;  %v503_v17 = vmul.f32 %v3096_v26, %v3096_v26 }
 0x412   :  { %v528_v23 = vsel %vm515_vm2, %v503_v17, 0.0 }
 0x414   :  { %v823_v1 = vpop.xlane.xlu1 %822 }
 0x418   :  { %v811_v38 = vpop.xlane.xlu1 %810 }
 0x419   :  { %v831_v16 = vmax.f32 %v811_v38, 1e-24 }
 0x41b   :  { %2311 = vrsqrt.f32 %v831_v16 }
 0x41c   :  { %v829_v17 = vpop.xlane.xlu1 %828 }
 0x41d   :  { %v837_v7 = vmax.f32 %v829_v17, 1e-24 }
 0x420   :  { %v817_v60 = vpop.xlane.xlu1 %816 }
 0x421   :  { %v833_v58 = vmax.f32 %v817_v60, 1e-24 }
 0x424   :  { %v865_v38 = vpop.permute.xlu1 %864 }
 0x428   :  { %v2312_v2 = vpop.eup %2311 }
 0x42f   :  { %517 = vadd.xlane.f32.xlu0 %v516_v37 }
 0x433   :  { %523 = vadd.xlane.f32.xlu0 %v522_v46 }
 0x437   :  { %526 = vadd.xlane.f32.xlu0 %v525_v42 }
 0x43b   :  { %529 = vadd.xlane.f32.xlu0 %v528_v23 }
 0x43f   :  { %535 = vadd.xlane.f32.xlu0 %v534_v35 }
 0x442   :  { %v808_v47 = vpop.xlane.xlu0 %807 }
 0x443   :  { %553 = vadd.xlane.f32.xlu0 %v552_v34  ;;  %v830_v42 = vmax.f32 %v808_v47, 1e-24  ;;  %v847_v34 = vmul.f32 %v2312_v2, %v2826_v20 }
 0x445   :  { %2313 = vrsqrt.f32 %v830_v42 }
 0x446   :  { %v351_v50 = vpop.permute.xlu0 %350  ;;  %2315 = vrsqrt.f32 %v833_v58 }
 0x447   :  { %541 = vadd.xlane.f32.xlu0 %v540_v43 }
 0x44a   :  { %v399_v37 = vpop.permute.xlu0 %398 }
 0x44b   :  { %v437_v39 = vsel %vm426_vm1, %v351_v50, %v399_v37  ;;  %559 = vadd.xlane.f32.xlu0 %v558_v40  ;;  %v835_v50 = vmax.f32 %v823_v1, 1e-24 }
 0x44c   :  { %v477_v15 = vmul.f32 %v2714_v9, %v437_v39 }
 0x44e   :  { %v3146_v59 = vadd.f32 %v477_v15, %v453_v28 }
 0x450   :  { %v509_v46 = vmul.f32 %v3146_v59, %v3146_v59 }
 0x452   :  { %v546_v10 = vsel %vm515_vm2, %v509_v46, 0.0  ;;  %v2314_v48 = vpop.eup %2313 }
 0x453   :  { %547 = vadd.xlane.f32.xlu0 %v546_v10  ;;  %v846_v47 = vmul.f32 %v2314_v48, %v2898_v13  ;;  %v2316_v40 = vpop.eup %2315 }
 0x454   :  { %v849_v15 = vmul.f32 %v2316_v40, %v2844_v33 }
 0x456   :  { %v871_v16 = vmul.f32 %v865_v38, %v849_v15 }
 0x47b   :  { %v820_v8 = vpop.xlane.xlu0 %819 }
 0x47c   :  { %v834_v32 = vmax.f32 %v820_v8, 1e-24 }
 0x47f   :  { %v826_v23 = vpop.xlane.xlu0 %825 }
 0x480   :  { %v836_v9 = vmax.f32 %v826_v23, 1e-24 }
 0x482   :  { %2317 = vrsqrt.f32 %v836_v9 }
 0x483   :  { %v814_v35 = vpop.xlane.xlu0 %813  ;;  %2319 = vrsqrt.f32 %v837_v7 }
 0x484   :  { %v832_v36 = vmax.f32 %v814_v35, 1e-24 }
 0x486   :  { %2321 = vrsqrt.f32 %v832_v36 }
 0x487   :  { %v863_v55 = vpop.permute.xlu0 %862  ;;  %2323 = vrsqrt.f32 %v834_v32  ;;  %v3515_v32 = vld [vmem:[#allocation12_spill] sm:$0xff] }
 0x488   :  { %v868_v43 = vmul.f32 %v863_v55, %v846_v47  ;;  %v869_v31 = vmul.f32 %v863_v55, %v847_v34  ;;  %2325 = vrsqrt.f32 %v835_v50  ;;  %v81_v36 = vrot.slane %v3515_v32, %v2938_v19 }
 0x48a   :  { %v884_v37 = vpack.c.bf16 %v869_v31, %v868_v43  ;;  %v97_v34 = vrot.slane %v81_v36, %v2938_v19 }
 0x48c   :  { %893 = vrot.lane.b32.xlu0 %v884_v37, %s2538_s24  ;;  %v119_v43 = vcombine.high %v97_v34, %v97_v34 }
 0x48f   :  { %v2318_v39 = vpop.eup %2317 }
 0x490   :  { %v2320_v28 = vpop.eup %2319  ;;  %v852_v13 = vmul.f32 %v2318_v39, %v2907_v18  ;;  %v615_v39 = vrot.slane %v119_v43, %v2626_v30 }
 0x491   :  { %v853_v1 = vmul.f32 %v2320_v28, %v2836_v25  ;;  %v521_v25 = vpop.xlane.xlu1 %520 }
 0x492   :  { %v874_v8 = vmul.f32 %v865_v38, %v852_v13  ;;  %v565_v2 = vmax.f32 %v521_v25, 1e-24  ;;  %v89_v25 = vcombine.high %v81_v36, %v81_v36 }
 0x493   :  { %v2322_v46 = vpop.eup %2321  ;;  %v875_v23 = vmul.f32 %v865_v38, %v853_v1 }
 0x494   :  { %v848_v10 = vmul.f32 %v2322_v46, %v2916_v24  ;;  %v2324_v20 = vpop.eup %2323  ;;  %2327 = vrsqrt.f32 %v565_v2 }
 0x495   :  { %v850_v17 = vmul.f32 %v2324_v20, %v2813_v11  ;;  %v2326_v58 = vpop.eup %2325  ;;  %v887_v24 = vpack.c.bf16 %v875_v23, %v874_v8  ;;  %v533_v48 = vpop.xlane.xlu1 %532 }
 0x496   :  { %v870_v42 = vmul.f32 %v865_v38, %v848_v10  ;;  %v851_v33 = vmul.f32 %v2326_v58, %v2816_v14 }
 0x497   :  { %v872_v9 = vmul.f32 %v863_v55, %v850_v17 }
 0x498   :  { %v885_v60 = vpack.c.bf16 %v871_v16, %v870_v42  ;;  %v873_v7 = vmul.f32 %v863_v55, %v851_v33 }
 0x499   :  { %v539_v47 = vpop.xlane.xlu1 %538 }
 0x49a   :  { %954 = vrot.lane.b32.xlu1 %v885_v60, %s2538_s24  ;;  %v886_v18 = vpack.c.bf16 %v873_v7, %v872_v9 }
 0x49d   :  { %v557_v50 = vpop.xlane.xlu1 %556 }
 0x49e   :  { %1076 = vrot.lane.b32.xlu1 %v887_v24, %s2538_s24 }
 0x4a1   :  { %v2328_v31 = vpop.eup %2327  ;;  %v545_v15 = vpop.xlane.xlu1 %544 }
 0x4a2   :  { %1015 = vrot.lane.b32.xlu1 %v886_v18, %s2538_s24  ;;  %v597_v40 = vmul.f32 %v2328_v31, %v2981_v4  ;;  %v573_v13 = vmax.f32 %v545_v15, 1e-24  ;;  %v569_v18 = vmax.f32 %v533_v48, 1e-24 }
 0x4a4   :  { %v633_v38 = vmul.f32 %v615_v39, %v597_v40 }
 0x4b8   :  { %v518_v11 = vpop.xlane.xlu0 %517 }
 0x4b9   :  { %v564_v35 = vmax.f32 %v518_v11, 1e-24 }
 0x4bb   :  { %2329 = vrsqrt.f32 %v564_v35  ;;  %v571_v35 = vmax.f32 %v539_v47, 1e-24 }
 0x4bc   :  { %v524_v14 = vpop.xlane.xlu0 %523  ;;  %2331 = vrsqrt.f32 %v573_v13 }
 0x4bd   :  { %v566_v7 = vmax.f32 %v524_v14, 1e-24 }
 0x4c0   :  { %v527_v55 = vpop.xlane.xlu0 %526 }
 0x4c1   :  { %v567_v9 = vmax.f32 %v527_v55, 1e-24  ;;  %v577_v55 = vmax.f32 %v557_v50, 1e-24 }
 0x4c4   :  { %v530_v37 = vpop.xlane.xlu0 %529 }
 0x4c5   :  { %v568_v24 = vmax.f32 %v530_v37, 1e-24 }
 0x4c8   :  { %v2330_v28 = vpop.eup %2329  ;;  %v536_v46 = vpop.xlane.xlu0 %535 }
 0x4c9   :  { %v596_v10 = vmul.f32 %v2330_v28, %v3068_v53  ;;  %v2332_v60 = vpop.eup %2331  ;;  %v570_v11 = vmax.f32 %v536_v46, 1e-24 }
 0x4ca   :  { %v605_v4 = vmul.f32 %v2332_v60, %v3018_v41  ;;  %v111_v41 = vrot.slane %v89_v25, %v2938_v19 }
 0x4cb   :  { %v632_v20 = vmul.f32 %v615_v39, %v596_v10 }
 0x4cc   :  { %v554_v1 = vpop.xlane.xlu0 %553  ;;  %v641_v33 = vmul.f32 %v615_v39, %v605_v4  ;;  %v120_v31 = vcombine.high %v111_v41, %v111_v41 }
 0x4cd   :  { %v876_v16 = vpack.c.bf16 %v633_v38, %v632_v20  ;;  %v576_v32 = vmax.f32 %v554_v1, 1e-24 }
 0x4ce   :  { %v3176_v19 = vrot.slane %v120_v31, %v2626_v30 }
 0x4cf   :  { %2143 = vmatprep.mubr.msk.bf16.mxu1 %vm515_vm2, %v876_v16 }
 0x4d0   :  { %v542_v42 = vpop.xlane.xlu0 %541 }
 0x4d1   :  { %v572_v17 = vmax.f32 %v542_v42, 1e-24 }
 0x4d3   :  { %2333 = vrsqrt.f32 %v572_v17 }
 0x4d4   :  { %2335 = vrsqrt.f32 %v567_v9  ;;  %v560_v2 = vpop.xlane.xlu0 %559 }
 0x4d5   :  { %2337 = vrsqrt.f32 %v568_v24 }
 0x4d6   :  { %2339 = vrsqrt.f32 %v566_v7 }
 0x4d7   :  { %2341 = vrsqrt.f32 %v569_v18 }
 0x4d8   :  { %2343 = vrsqrt.f32 %v570_v11 }
 0x4d9   :  { %2345 = vrsqrt.f32 %v571_v35 }
 0x4da   :  { %2347 = vrsqrt.f32 %v576_v32 }
 0x4db   :  { %2349 = vrsqrt.f32 %v577_v55 }
 0x4dc   :  { %v548_v43 = vpop.xlane.xlu0 %547 }
 0x4dd   :  { %v574_v46 = vmax.f32 %v548_v43, 1e-24 }
 0x4e0   :  { %v2334_v8 = vpop.eup %2333 }
 0x4e1   :  { %v604_v58 = vmul.f32 %v2334_v8, %v3124_v27  ;;  %v563_v27 = vpop.xlane.xlu1 %562  ;;  %v2336_v34 = vpop.eup %2335 }
 0x4e2   :  { %v2338_v40 = vpop.eup %2337  ;;  %v599_v37 = vmul.f32 %v2336_v34, %v3089_v12  ;;  %v623_v12 = vrot.slane %v3052_v22, %v2626_v30  ;;  %v579_v10 = vmax.f32 %v563_v27, 1e-24 }
 0x4e3   :  { %v640_v23 = vmul.f32 %v615_v39, %v604_v58  ;;  %v2340_v14 = vpop.eup %2339  ;;  %v578_v39 = vmax.f32 %v560_v2, 1e-24  ;;  %v600_v47 = vmul.f32 %v2338_v40, %v3096_v26  ;;  %v3516_v58 = vld [vmem:[#allocation14_spill] sm:$0xff] }
 0x4e4   :  { %v2342_v48 = vpop.eup %2341  ;;  %v598_v15 = vmul.f32 %v2340_v14, %v3078_v52  ;;  %v635_v38 = vmul.f32 %v3176_v19, %v599_v37 }
 0x4e5   :  { %v880_v53 = vpack.c.bf16 %v641_v33, %v640_v23  ;;  %v551_v36 = vpop.xlane.xlu1 %550  ;;  %v601_v13 = vmul.f32 %v2342_v48, %v2988_v5  ;;  %2351 = vrsqrt.f32 %v578_v39  ;;  %v636_v26 = vmul.f32 %v623_v12, %v600_v47  ;;  %v2344_v22 = vpop.eup %2343 }
 0x4e6   :  { %v575_v20 = vmax.f32 %v551_v36, 1e-24  ;;  %2353 = vrsqrt.f32 %v574_v46  ;;  %v634_v52 = vmul.f32 %v3176_v19, %v598_v15  ;;  %v2346_v17 = vpop.eup %2345  ;;  %v602_v60 = vmul.f32 %v2344_v22, %v3107_v29 }
 0x4e7   :  { %2155 = vmatprep.mubr.msk.bf16.mxu0 %vm515_vm2, %v880_v53  ;;  %2355 = vrsqrt.f32 %v579_v10  ;;  %v637_v1 = vmul.f32 %v623_v12, %v601_v13  ;;  %v2348_v5 = vpop.eup %2347  ;;  %v627_v23 = vrot.slane %v3516_v58, %v2626_v30  ;;  %v603_v33 = vmul.f32 %v2346_v17, %v2995_v49 }
 0x4e8   :  { %2357 = vrsqrt.f32 %v575_v20  ;;  %v877_v16 = vpack.c.bf16 %v635_v38, %v634_v52  ;;  %v2350_v4 = vpop.eup %2349  ;;  %v608_v9 = vmul.f32 %v2348_v5, %v3115_v45 }
 0x4e9   :  { %v878_v42 = vpack.c.bf16 %v637_v1, %v636_v26  ;;  %v638_v7 = vmul.f32 %v627_v23, %v602_v60  ;;  %v609_v18 = vmul.f32 %v2350_v4, %v3004_v21  ;;  %v639_v41 = vmul.f32 %v627_v23, %v603_v33 }
 0x4ea   :  { %v644_v30 = vmul.f32 %v623_v12, %v608_v9 }
 0x4eb   :  { %v879_v35 = vpack.c.bf16 %v639_v41, %v638_v7  ;;  %v645_v27 = vmul.f32 %v623_v12, %v609_v18 }
 0x4ed   :  { %v882_v31 = vpack.c.bf16 %v645_v27, %v644_v30 }
 0x4f2   :  { %v2352_v24 = vpop.eup %2351 }
 0x4f3   :  { %v2354_v25 = vpop.eup %2353  ;;  %v610_v49 = vmul.f32 %v2352_v24, %v3133_v44 }
 0x4f4   :  { %v2356_v2 = vpop.eup %2355  ;;  %v606_v32 = vmul.f32 %v2354_v25, %v3146_v59 }
 0x4f5   :  { %v2358_v11 = vpop.eup %2357  ;;  %v611_v45 = vmul.f32 %v2356_v2, %v3029_v3  ;;  %v646_v59 = vmul.f32 %v627_v23, %v610_v49 }
 0x4f6   :  { %v607_v40 = vmul.f32 %v2358_v11, %v3037_v6  ;;  %v642_v44 = vmul.f32 %v3176_v19, %v606_v32 }
 0x4f7   :  { %v647_v55 = vmul.f32 %v627_v23, %v611_v45 }
 0x4f8   :  { %v643_v3 = vmul.f32 %v3176_v19, %v607_v40 }
 0x4f9   :  { %v883_v48 = vpack.c.bf16 %v647_v55, %v646_v59 }
 0x4fa   :  { %v881_v14 = vpack.c.bf16 %v643_v3, %v642_v44 }
 0x4fe   :  { %v894_v28 = vpop.permute.xlu0 %893 }
 0x4ff   :  { %v902_v50 = vsel %vm515_vm2, %v894_v28, 0  ;;  %2221 = vmatprep.subr.msk.bf16.mxu1 %vm515_vm2, %v894_v28 }
 0x500   :  { %2142 = vmatpush3.bf16.xpose.msra.mxu1 %v902_v50 }
 0x507   :  { %2144 = vmatmul.mubr.msk.bf16.vlgmr.msra.gmra.mxu1 %vm515_vm2, %v877_v16 }
 0x508   :  { %2149 = vmatprep.mubr.msk.bf16.mxu1 %vm515_vm2, %v878_v42 }
 0x50c   :  { %v955_v8 = vpop.permute.xlu1 %954 }
 0x50d   :  { %v963_v53 = vsel %vm515_vm2, %v955_v8, 0  ;;  %2222 = vmatprep.subr.msk.bf16.mxu1 %vm515_vm2, %v955_v8 }
 0x50e   :  { %2148 = vmatpush3.bf16.xpose.msra.mxu1 %v963_v53 }
 0x510   :  { %v1077_v29 = vpop.permute.xlu1 %1076 }
 0x511   :  { %2224 = vmatprep.subr.msk.bf16.mxu1 %vm515_vm2, %v1077_v29  ;;  %v1085_v43 = vsel %vm515_vm2, %v1077_v29, 0 }
 0x514   :  { %v1016_v34 = vpop.permute.xlu1 %1015 }
 0x515   :  { %2150 = vmatmul.mubr.msk.bf16.vlgmr.msra.gmra.mxu1 %vm515_vm2, %v879_v35  ;;  %2223 = vmatprep.subr.msk.bf16.mxu0 %vm515_vm2, %v1016_v34  ;;  %v1024_v21 = vsel %vm515_vm2, %v1016_v34, 0 }
 0x516   :  { %2154 = vmatpush3.bf16.xpose.msra.mxu0 %v1024_v21  ;;  %2160 = vmatpush3.bf16.xpose.msra.mxu1 %v1085_v43 }
 0x517   :  { %2161 = vmatprep.mubr.msk.bf16.mxu1 %vm515_vm2, %v882_v31 }
 0x51d   :  { %2156 = vmatmul.mubr.msk.bf16.vlgmr.msra.gmra.mxu0 %vm515_vm2, %v881_v14  ;;  %2162 = vmatmul.mubr.msk.bf16.vlgmr.msra.gmra.mxu1 %vm515_vm2, %v883_v48 }
 0x5c7   :  { %v3211_v37 = vpop.f32.mrf.mxu1 }
 0x5c8   :  { %v1142_v6 = vsel %vm515_vm2, %v3211_v37, -inf }
 0x5c9   :  { %1143 = vmax.xlane.f32.xlu0 %v1142_v6  ;;  %v3215_v36 = vpop.f32.mrf.mxu1 }
 0x5ca   :  { %v1136_v38 = vsel %vm515_vm2, %v3215_v36, -inf }
 0x5cb   :  { %v2146_v39 = vpop.f32.mrf.mxu1 }
 0x5cc   :  { %v1145_v28 = vsel %vm515_vm2, %v2146_v39, -inf }
 0x5cd   :  { %1146 = vmax.xlane.f32.xlu1 %v1145_v28  ;;  %v3218_v19 = vpop.f32.mrf.mxu1 }
 0x5ce   :  { %v1139_v1 = vsel %vm515_vm2, %v3218_v19, -inf }
 0x5d5   :  { %v3220_v47 = vpop.f32.mrf.mxu1 }
 0x5d6   :  { %v1154_v22 = vsel %vm515_vm2, %v3220_v47, -inf }
 0x5d7   :  { %v3222_v15 = vpop.f32.mrf.mxu1 }
 0x5d8   :  { %v1148_v60 = vsel %vm515_vm2, %v3222_v15, -inf }
 0x5d9   :  { %v3230_v10 = vpop.f32.mrf.mxu1 }
 0x5da   :  { %v1157_v16 = vsel %vm515_vm2, %v3230_v10, -inf }
 0x5db   :  { %v3235_v52 = vpop.f32.mrf.mxu1 }
 0x5dc   :  { %v1151_v17 = vsel %vm515_vm2, %v3235_v52, -inf }
 0x5dd   :  { %v3224_v46 = vpop.f32.mrf.mxu0  ;;  %v3241_v42 = vpop.f32.mrf.mxu1 }
 0x5de   :  { %v1178_v58 = vsel %vm515_vm2, %v3241_v42, -inf  ;;  %v1166_v24 = vsel %vm515_vm2, %v3224_v46, -inf }
 0x5df   :  { %v3226_v50 = vpop.f32.mrf.mxu0  ;;  %v3247_v5 = vpop.f32.mrf.mxu1 }
 0x5e0   :  { %v1160_v12 = vsel %vm515_vm2, %v3226_v50, -inf  ;;  %v1172_v53 = vsel %vm515_vm2, %v3247_v5, -inf }
 0x5e1   :  { %v2158_v13 = vpop.f32.mrf.mxu0  ;;  %1161 = vmax.xlane.f32.xlu0 %v1160_v12  ;;  %v3252_v8 = vpop.f32.mrf.mxu1 }
 0x5e2   :  { %v1169_v4 = vsel %vm515_vm2, %v2158_v13, -inf  ;;  %v1181_v23 = vsel %vm515_vm2, %v3252_v8, -inf }
 0x5e3   :  { %v1063_v20 = vpop.f32.mrf.mxu0  ;;  %v3258_v33 = vpop.f32.mrf.mxu1 }
 0x5e4   :  { %v1163_v26 = vsel %vm515_vm2, %v1063_v20, -inf  ;;  %v1175_v9 = vsel %vm515_vm2, %v3258_v33, -inf }
 0x5e5   :  { %1137 = vmax.xlane.f32.xlu0 %v1136_v38  ;;  %1164 = vmax.xlane.f32.xlu1 %v1163_v26 }
 0x5e9   :  { %1140 = vmax.xlane.f32.xlu0 %v1139_v1  ;;  %1158 = vmax.xlane.f32.xlu1 %v1157_v16 }
 0x5ed   :  { %1155 = vmax.xlane.f32.xlu0 %v1154_v22  ;;  %1152 = vmax.xlane.f32.xlu1 %v1151_v17 }
 0x5f1   :  { %1149 = vmax.xlane.f32.xlu0 %v1148_v60  ;;  %1170 = vmax.xlane.f32.xlu1 %v1169_v4 }
 0x5f5   :  { %1179 = vmax.xlane.f32.xlu0 %v1178_v58  ;;  %1182 = vmax.xlane.f32.xlu1 %v1181_v23 }
 0x5f9   :  { %1173 = vmax.xlane.f32.xlu0 %v1172_v53  ;;  %1176 = vmax.xlane.f32.xlu1 %v1175_v9 }
 0x5fd   :  { %1167 = vmax.xlane.f32.xlu0 %v1166_v24 }
 0x652   :  { %v1144_v7 = vpop.xlane.xlu0 %1143 }
 0x653   :  { %v1186_v3 = vsub.f32 %v3211_v37, %v1144_v7 }
 0x656   :  { %v1147_v18 = vpop.xlane.xlu1 %1146 }
 0x657   :  { %v1187_v35 = vsub.f32 %v2146_v39, %v1147_v18  ;;  %v1204_v39 = vmul.f32 1.442695, %v1186_v3 }
 0x659   :  { %v1206_v43 = vmul.f32 1.442695, %v1187_v35 }
 0x66a   :  { %v1162_v25 = vpop.xlane.xlu0 %1161 }
 0x66b   :  { %v1192_v28 = vsub.f32 %v3226_v50, %v1162_v25 }
 0x66d   :  { %v1216_v37 = vmul.f32 1.442695, %v1192_v28 }
 0x66e   :  { %v1138_v29 = vpop.xlane.xlu0 %1137  ;;  %v1165_v2 = vpop.xlane.xlu1 %1164 }
 0x66f   :  { %v1193_v21 = vsub.f32 %v1063_v20, %v1165_v2  ;;  %v1184_v38 = vsub.f32 %v3215_v36, %v1138_v29 }
 0x671   :  { %v1218_v40 = vmul.f32 1.442695, %v1193_v21  ;;  %v1200_v50 = vmul.f32 1.442695, %v1184_v38  ;;  %v888_v21 = vpack.c.bf16 %v2645_v54, %v2642_v51  ;;  %v889_v51 = vpack.c.bf16 %v2670_v61, %v2678_v63 }
 0x672   :  { %v1141_v41 = vpop.xlane.xlu0 %1140  ;;  %v1159_v30 = vpop.xlane.xlu1 %1158  ;;  %v890_v61 = vpack.c.bf16 %v2657_v57, %v2652_v56 }
 0x673   :  { %v1185_v44 = vsub.f32 %v3218_v19, %v1141_v41  ;;  %v1191_v14 = vsub.f32 %v3230_v10, %v1159_v30 }
 0x675   :  { %v1202_v55 = vmul.f32 1.442695, %v1185_v44 }
 0x676   :  { %v1156_v11 = vpop.xlane.xlu0 %1155  ;;  %v1153_v49 = vpop.xlane.xlu1 %1152 }
 0x677   :  { %v1189_v20 = vsub.f32 %v3235_v52, %v1153_v49  ;;  %v1190_v1 = vsub.f32 %v3220_v47, %v1156_v11 }
 0x679   :  { %v1210_v10 = vmul.f32 1.442695, %v1189_v20  ;;  %v1212_v36 = vmul.f32 1.442695, %v1190_v1 }
 0x67a   :  { %v1150_v27 = vpop.xlane.xlu0 %1149  ;;  %v1171_v32 = vpop.xlane.xlu1 %1170 }
 0x67b   :  { %v1195_v45 = vsub.f32 %v2158_v13, %v1171_v32  ;;  %v1214_v13 = vmul.f32 1.442695, %v1191_v14  ;;  %v1188_v22 = vsub.f32 %v3222_v15, %v1150_v27 }
 0x67d   :  { %v1222_v34 = vmul.f32 1.442695, %v1195_v45  ;;  %v1208_v47 = vmul.f32 1.442695, %v1188_v22 }
 0x67e   :  { %v1180_v31 = vpop.xlane.xlu0 %1179  ;;  %v1183_v44 = vpop.xlane.xlu1 %1182 }
 0x67f   :  { %2359 = vpow2.f32 %v1222_v34  ;;  %v1198_v58 = vsub.f32 %v3241_v42, %v1180_v31 }
 0x680   :  { %2361 = vpow2.f32 %v1206_v43 }
 0x681   :  { %2363 = vpow2.f32 %v1218_v40  ;;  %v1228_v24 = vmul.f32 1.442695, %v1198_v58  ;;  %v891_v40 = vpack.c.bf16 %v2680_v0, %v2674_v62 }
 0x682   :  { %v1174_v59 = vpop.xlane.xlu0 %1173  ;;  %2365 = vpow2.f32 %v1202_v55  ;;  %v1177_v3 = vpop.xlane.xlu1 %1176 }
 0x683   :  { %v1196_v7 = vsub.f32 %v3247_v5, %v1174_v59  ;;  %v1199_v59 = vsub.f32 %v3252_v8, %v1183_v44  ;;  %v1197_v14 = vsub.f32 %v3258_v33, %v1177_v3 }
 0x685   :  { %v1224_v2 = vmul.f32 1.442695, %v1196_v7  ;;  %v1230_v55 = vmul.f32 1.442695, %v1199_v59  ;;  %v1226_v54 = vmul.f32 1.442695, %v1197_v14 }
 0x686   :  { %v1168_v48 = vpop.xlane.xlu0 %1167 }
 0x687   :  { %v1194_v6 = vsub.f32 %v3224_v46, %v1168_v48 }
 0x689   :  { %v1220_v12 = vmul.f32 1.442695, %v1194_v6 }
 0x68b   :  { %2367 = vpow2.f32 %v1220_v12 }
 0x68c   :  { %v3272_v19 = vpop.eup %2359  ;;  %2369 = vpow2.f32 %v1204_v39 }
 0x68d   :  { %2371 = vpow2.f32 %v1214_v13  ;;  %v1265_v46 = vsel %vm515_vm2, %v3272_v19, 0.0  ;;  %v3277_v26 = vpop.eup %2361 }
 0x68e   :  { %1266 = vadd.xlane.f32.xlu1 %v1265_v46  ;;  %2373 = vpow2.f32 %v1216_v37  ;;  %v1241_v52 = vsel %vm515_vm2, %v3277_v26, 0.0  ;;  %v3282_v16 = vpop.eup %2363 }
 0x68f   :  { %2375 = vpow2.f32 %v1210_v10  ;;  %v1259_v17 = vsel %vm515_vm2, %v3282_v16, 0.0  ;;  %v3287_v60 = vpop.eup %2365 }
 0x690   :  { %2377 = vpow2.f32 %v1200_v50  ;;  %v1235_v15 = vsel %vm515_vm2, %v3287_v60, 0.0 }
 0x691   :  { %2379 = vpow2.f32 %v1212_v36 }
 0x692   :  { %1242 = vadd.xlane.f32.xlu1 %v1241_v52  ;;  %2381 = vpow2.f32 %v1208_v47 }
 0x693   :  { %2383 = vpow2.f32 %v1228_v24 }
 0x694   :  { %2385 = vpow2.f32 %v1224_v2 }
 0x695   :  { %2387 = vpow2.f32 %v1230_v55 }
 0x696   :  { %1260 = vadd.xlane.f32.xlu1 %v1259_v17  ;;  %2389 = vpow2.f32 %v1226_v54 }
 0x698   :  { %v3289_v4 = vpop.eup %2367 }
 0x699   :  { %v1262_v23 = vsel %vm515_vm2, %v3289_v4, 0.0  ;;  %v3294_v53 = vpop.eup %2369 }
 0x69a   :  { %1263 = vadd.xlane.f32.xlu0 %v1262_v23  ;;  %v3298_v9 = vpop.eup %2371  ;;  %1236 = vadd.xlane.f32.xlu1 %v1235_v15  ;;  %v1238_v18 = vsel %vm515_vm2, %v3294_v53, 0.0 }
 0x69b   :  { %v3303_v42 = vpop.eup %2373  ;;  %v1253_v25 = vsel %vm515_vm2, %v3298_v9, 0.0 }
 0x69c   :  { %v3307_v29 = vpop.eup %2375  ;;  %v1256_v41 = vsel %vm515_vm2, %v3303_v42, 0.0 }
 0x69d   :  { %v3311_v30 = vpop.eup %2377  ;;  %v1247_v5 = vsel %vm515_vm2, %v3307_v29, 0.0 }
 0x69e   :  { %1239 = vadd.xlane.f32.xlu0 %v1238_v18  ;;  %1254 = vadd.xlane.f32.xlu1 %v1253_v25  ;;  %v1232_v11 = vsel %vm515_vm2, %v3311_v30, 0.0  ;;  %v3317_v49 = vpop.eup %2379 }
 0x69f   :  { %v1250_v35 = vsel %vm515_vm2, %v3317_v49, 0.0  ;;  %v3321_v27 = vpop.eup %2381 }
 0x6a0   :  { %v1244_v32 = vsel %vm515_vm2, %v3321_v27, 0.0  ;;  %v3325_v45 = vpop.eup %2383 }
 0x6a1   :  { %v1274_v34 = vsel %vm515_vm2, %v3325_v45, 0.0  ;;  %v3329_v43 = vpop.eup %2385 }
 0x6a2   :  { %1257 = vadd.xlane.f32.xlu0 %v1256_v41  ;;  %1248 = vadd.xlane.f32.xlu1 %v1247_v5  ;;  %v1268_v31 = vsel %vm515_vm2, %v3329_v43, 0.0  ;;  %v3344_v48 = vpop.eup %2387 }
 0x6a3   :  { %v1277_v62 = vsel %vm515_vm2, %v3344_v48, 0.0  ;;  %v3348_v0 = vpop.eup %2389 }
 0x6a4   :  { %v1271_v8 = vsel %vm515_vm2, %v3348_v0, 0.0 }
 0x6a6   :  { %1233 = vadd.xlane.f32.xlu0 %v1232_v11 }
 0x6aa   :  { %1251 = vadd.xlane.f32.xlu0 %v1250_v35 }
 0x6ae   :  { %1245 = vadd.xlane.f32.xlu0 %v1244_v32 }
 0x6b2   :  { %1275 = vadd.xlane.f32.xlu0 %v1274_v34 }
 0x6b3   :  { %1321 = vrot.lane.b32.xlu1 %v888_v21, %s2551_s28 }
 0x6b6   :  { %1269 = vadd.xlane.f32.xlu0 %v1268_v31 }
 0x6b7   :  { %1498 = vrot.lane.b32.xlu1 %v891_v40, %s2551_s28 }
 0x6cc   :  { %1380 = vrot.lane.b32.xlu0 %v889_v51, %s2551_s28 }
 0x6db   :  { %1278 = vadd.xlane.f32.xlu1 %v1277_v62 }
 0x6df   :  { %1272 = vadd.xlane.f32.xlu1 %v1271_v8 }
 0x6f0   :  { %1439 = vrot.lane.b32.xlu1 %v890_v61, %s2551_s28 }
 0x717   :  { %v3355_v63 = vpop.xlane.xlu1 %1266 }
 0x71b   :  { %v1243_v33 = vpop.xlane.xlu1 %1242 }
 0x71c   :  { %2391 = vrcp.f32 %v1243_v33 }
 0x71f   :  { %v1261_v6 = vpop.xlane.xlu1 %1260 }
 0x723   :  { %v1264_v39 = vpop.xlane.xlu0 %1263  ;;  %v1237_v28 = vpop.xlane.xlu1 %1236 }
 0x724   :  { %2393 = vrcp.f32 %v1237_v28 }
 0x727   :  { %v1240_v12 = vpop.xlane.xlu0 %1239  ;;  %v1255_v13 = vpop.xlane.xlu1 %1254 }
 0x728   :  { %2395 = vrcp.f32 %v1240_v12 }
 0x729   :  { %v2392_v46 = vpop.eup %2391 }
 0x72a   :  { %v1299_v7 = vmul.f32 %v2392_v46, %v3277_v26  ;;  %v2281_v46 = vld [vmem:[#allocation7 + $0x8] sm:$0xff]  }
 0x72b   :  { %v1258_v20 = vpop.xlane.xlu0 %1257  ;;  %v1249_v37 = vpop.xlane.xlu1 %1248 }
 0x72c   :  { %2397 = vrcp.f32 %v1258_v20  ;;  %v2280_v20 = vld [vmem:[#allocation7 + $0x10] sm:$0xff]  }
 0x72d   :  { %2399 = vrcp.f32 %v1261_v6 }
 0x72f   :  { %v1234_v38 = vpop.xlane.xlu0 %1233  ;;  %v1322_v56 = vpop.permute.xlu1 %1321 }
 0x730   :  { %2401 = vrcp.f32 %v1234_v38  ;;  %2165 = vmatprep.subr.bf16.mxu0 %v1322_v56 }
 0x731   :  { %2166 = vmatpush3.bf16.msra.mxu0 %v1322_v56  ;;  %v2394_v50 = vpop.eup %2393 }
 0x732   :  { %v1297_v23 = vmul.f32 %v2394_v50, %v3287_v60  ;;  %v2282_v50 = vld [vmem:[#allocation7] sm:$0xff]  }
 0x733   :  { %v1252_v57 = vpop.xlane.xlu0 %1251 }
 0x734   :  { %2403 = vrcp.f32 %v1252_v57 }
 0x735   :  { %2405 = vrcp.f32 %v1249_v37  ;;  %v2396_v1 = vpop.eup %2395 }
 0x736   :  { %2407 = vrcp.f32 %v1255_v13  ;;  %v1298_v47 = vmul.f32 %v2396_v1, %v3294_v53 }
 0x737   :  { %v1246_v10 = vpop.xlane.xlu0 %1245 }
 0x738   :  { %2409 = vrcp.f32 %v1246_v10  ;;  %v1313_v2 = vpack.c.bf16 %v1299_v7, %v1298_v47 }
 0x739   :  { %v2398_v52 = vpop.eup %2397  ;;  %2411 = vrcp.f32 %v1264_v39 }
 0x73a   :  { %v2400_v22 = vpop.eup %2399  ;;  %v1304_v15 = vmul.f32 %v2398_v52, %v3303_v42  ;;  %v1499_v42 = vpop.permute.xlu1 %1498  ;;  %2413 = vrcp.f32 %v3355_v63 }
 0x73b   :  { %v1276_v36 = vpop.xlane.xlu0 %1275  ;;  %v1305_v25 = vmul.f32 %v2400_v22, %v3282_v16 }
 0x73d   :  { %v2402_v17 = vpop.eup %2401  ;;  %v1316_v5 = vpack.c.bf16 %v1305_v25, %v1304_v15 }
 0x73e   :  { %v1296_v58 = vmul.f32 %v2402_v17, %v3311_v30 }
 0x73f   :  { %v1270_v24 = vpop.xlane.xlu0 %1269 }
 0x740   :  { %v1312_v18 = vpack.c.bf16 %v1297_v23, %v1296_v58 }
 0x741   :  { %v2404_v41 = vpop.eup %2403 }
 0x742   :  { %2167 = vmatprep.mubr.msk.bf16.mxu0 %vm515_vm2, %v1312_v18  ;;  %v2406_v11 = vpop.eup %2405  ;;  %v1302_v26 = vmul.f32 %v2404_v41, %v3317_v49 }
 0x743   :  { %v1381_v35 = vpop.permute.xlu0 %1380  ;;  %2168 = vmatmul.mubr.msk.bf16.vlgmr.msra.gmra.mxu0 %vm515_vm2, %v1313_v2  ;;  %v2408_v53 = vpop.eup %2407  ;;  %v1301_v30 = vmul.f32 %v2406_v11, %v3307_v29 }
 0x744   :  { %2171 = vmatprep.subr.bf16.mxu1 %v1381_v35  ;;  %2179 = vmatprep.mubr.msk.bf16.mxu0 %vm515_vm2, %v1316_v5  ;;  %v1303_v32 = vmul.f32 %v2408_v53, %v3298_v9 }
 0x745   :  { %v2410_v60 = vpop.eup %2409  ;;  %2172 = vmatpush3.bf16.msra.mxu1 %v1381_v35 }
 0x746   :  { %2183 = vmatprep.subr.bf16.mxu1 %v1499_v42  ;;  %v1300_v16 = vmul.f32 %v2410_v60, %v3321_v27  ;;  %v1315_v21 = vpack.c.bf16 %v1303_v32, %v1302_v26  ;;  %v2412_v49 = vpop.eup %2411 }
 0x747   :  { %v2414_v29 = vpop.eup %2413  ;;  %v1306_v9 = vmul.f32 %v2412_v49, %v3289_v4 }
 0x748   :  { %v1314_v34 = vpack.c.bf16 %v1301_v30, %v1300_v16  ;;  %v1307_v44 = vmul.f32 %v2414_v29, %v3272_v19 }
 0x74a   :  { %2173 = vmatprep.mubr.msk.bf16.mxu1 %vm515_vm2, %v1314_v34  ;;  %v1317_v59 = vpack.c.bf16 %v1307_v44, %v1306_v9 }
 0x74b   :  { %2174 = vmatmul.mubr.msk.bf16.vlgmr.msra.gmra.mxu1 %vm515_vm2, %v1315_v21 }
 0x74c   :  { %2184 = vmatpush3.bf16.msra.mxu1 %v1499_v42 }
 0x764   :  { %v1279_v31 = vpop.xlane.xlu1 %1278 }
 0x765   :  { %2415 = vrcp.f32 %v1279_v31 }
 0x766   :  { %2417 = vrcp.f32 %v1270_v24 }
 0x767   :  { %2419 = vrcp.f32 %v1276_v36 }
 0x768   :  { %v1273_v27 = vpop.xlane.xlu1 %1272 }
 0x769   :  { %2421 = vrcp.f32 %v1273_v27 }
 0x76c   :  { %v1440_v40 = vpop.permute.xlu1 %1439 }
 0x76d   :  { %2177 = vmatprep.subr.bf16.mxu0 %v1440_v40 }
 0x76e   :  { %2178 = vmatpush3.bf16.msra.mxu0 %v1440_v40 }
 0x771   :  { %2180 = vmatmul.mubr.msk.bf16.vlgmr.msra.gmra.mxu0 %vm515_vm2, %v1317_v59 }
 0x772   :  { %v2416_v3 = vpop.eup %2415 }
 0x773   :  { %v2418_v55 = vpop.eup %2417  ;;  %v1311_v54 = vmul.f32 %v2416_v3, %v3344_v48 }
 0x774   :  { %v2420_v14 = vpop.eup %2419  ;;  %v1308_v62 = vmul.f32 %v2418_v55, %v3329_v43 }
 0x775   :  { %v1310_v4 = vmul.f32 %v2420_v14, %v3325_v45 }
 0x776   :  { %v2422_v51 = vpop.eup %2421 }
 0x777   :  { %v1309_v8 = vmul.f32 %v2422_v51, %v3348_v0  ;;  %v1319_v63 = vpack.c.bf16 %v1311_v54, %v1310_v4  ;;  %v2279_v0 = vld [vmem:[#allocation7 + $0x18] sm:$0xff]  }
 0x778   :  { %2189 = vmatprep.subr.bf16.mxu0 %v2279_v0 }
 0x779   :  { %v1318_v61 = vpack.c.bf16 %v1309_v8, %v1308_v62  ;;  %2190 = vmatpush3.bf16.msra.mxu0 %v2279_v0  ;;  %v2447_v8 = vld [vmem:[%s3500_s0 + $0x10] sm:$0xff] }
 0x77a   :  { %2191 = vmatprep.subr.bf16.mxu0 %v2280_v20 }
 0x77b   :  { %2185 = vmatprep.mubr.msk.bf16.mxu1 %vm515_vm2, %v1318_v61  ;;  %v2448_v61 = vld [vmem:[%s3500_s0] sm:$0xff] }
 0x77c   :  { %2186 = vmatmul.mubr.msk.bf16.vlgmr.msra.gmra.mxu1 %vm515_vm2, %v1319_v63 }
 0x77d   :  { %2192 = vmatpush3.bf16.msra.mxu0 %v2280_v20 }
 0x77e   :  { %2193 = vmatprep.subr.bf16.mxu0 %v2281_v46 }
 0x781   :  { %2194 = vmatpush3.bf16.msra.mxu0 %v2281_v46  ;;  %v2286_v46 = vld [vmem:[%s3504_s4 + $0x20] ss:$8 sps:$4 sm:$0xff]  }
 0x782   :  { %2195 = vmatprep.subr.bf16.mxu0 %v2282_v50 }
 0x785   :  { %2196 = vmatpush3.bf16.msra.mxu0 %v2282_v50  ;;  %v2291_v50 = vld [vmem:[%s3504_s4 + $0x14] ss:$8 sps:$4 sm:$0xff]  }
 0x803   :  { %v2169_v19 = vpop.f32.mrf.mxu0 }
 0x805   :  { %v1364_v33 = vpop.f32.mrf.mxu0 }
 0x807   :  { %v2170_v6 = vpop.f32.mrf.mxu0 }
 0x808   :  { %v2244_v39 = vpack.i.bf16 %v2170_v6, %v2169_v19 }
 0x809   :  { %v1367_v37 = vpop.f32.mrf.mxu0 }
 0x80a   :  { %2245 = vrot.lane.b32.xlu0 %v2244_v39, %s2552_s29  ;;  %v2449_v39 = vld [vmem:[%s3500_s0 + $0x18] sm:$0xff] }
 0x80b   :  { %v2175_v28 = vpop.f32.mrf.mxu1 }
 0x80d   :  { %v1423_v48 = vpop.f32.mrf.mxu1 }
 0x80f   :  { %v2176_v12 = vpop.f32.mrf.mxu1 }
 0x810   :  { %v2259_v45 = vpack.i.bf16 %v2176_v12, %v2175_v28 }
 0x811   :  { %v1426_v43 = vpop.f32.mrf.mxu1 }
 0x812   :  { %v2254_v13 = vpack.i.bf16 %v1426_v43, %v1423_v48  ;;  %v2450_v48 = vld [vmem:[%s3500_s0 + $0x8] sm:$0xff] }
 0x814   :  { %2255 = vrot.lane.b32.xlu0 %v2254_v13, %s2551_s28 }
 0x818   :  { %2260 = vrot.lane.b32.xlu0 %v2259_v45, %s2553_s30 }
 0x831   :  { %v2181_v38 = vpop.f32.mrf.mxu0 }
 0x833   :  { %v1482_v56 = vpop.f32.mrf.mxu0 }
 0x835   :  { %v2182_v57 = vpop.f32.mrf.mxu0 }
 0x836   :  { %v2249_v10 = vpack.i.bf16 %v2182_v57, %v2181_v38  ;;  %v2283_v57 = vld [vmem:[%s3504_s4 + $0x30] ss:$8 sps:$4 sm:$0xff]  }
 0x837   :  { %v1485_v49 = vpop.f32.mrf.mxu0 }
 0x838   :  { %2250 = vrot.lane.b32.xlu1 %v2249_v10, %s2552_s29  ;;  %v2288_v10 = vld [vmem:[%s3504_s4 + $0x24] ss:$8 sps:$4 sm:$0xff]  }
 0x83c   :  { %v2187_v1 = vpop.f32.mrf.mxu1 }
 0x83e   :  { %v1541_v52 = vpop.f32.mrf.mxu1 }
 0x840   :  { %v2188_v36 = vpop.f32.mrf.mxu1 }
 0x841   :  { %v2269_v47 = vpack.i.bf16 %v2188_v36, %v2187_v1  ;;  %v3517_v1 = vld [vmem:[#allocation13_spill] sm:$0xff] }
 0x842   :  { %v1544_v22 = vpop.f32.mrf.mxu1  ;;  %v2294_v36 = vld [vmem:[%s3504_s4 + $0x4] ss:$8 sps:$4 sm:$0xff]  }
 0x843   :  { %v2264_v17 = vpack.i.bf16 %v1544_v22, %v1541_v52  ;;  %v2289_v52 = vld [vmem:[%s3504_s4 + $0x10] ss:$8 sps:$4 sm:$0xff]   ;;  %v2292_v22 = vld [vmem:[%s3504_s4] ss:$8 sps:$4 sm:$0xff]  }
 0x845   :  { %2265 = vrot.lane.b32.xlu1 %v2264_v17, %s2551_s28  ;;  %v2554_v17 = vmov 0  }
 0x846   :  { %1839 = vmatprep.mubr.bf16.mxu1 %v2554_v17 }
 0x849   :  { %2270 = vrot.lane.b32.xlu1 %v2269_v47, %s2553_s30 }
 0x87c   :  { %v2246_v58 = vpop.permute.xlu0 %2245 }
 0x87d   :  { %v2248_v15 = vunpack.i.h.bf16 %v2246_v58  ;;  %v2247_v24 = vunpack.i.l.bf16 %v2246_v58 }
 0x87f   :  { %v1604_v2 = vsel %vm515_vm2, %v1364_v33, %v2247_v24  ;;  %v1605_v41 = vsel %vm515_vm2, %v1367_v37, %v2248_v15 }
 0x886   :  { %v2256_v23 = vpop.permute.xlu0 %2255 }
 0x887   :  { %v2258_v7 = vunpack.i.h.bf16 %v2256_v23  ;;  %v2257_v18 = vunpack.i.l.bf16 %v2256_v23 }
 0x889   :  { %v1609_v35 = vsel %vm1608_vm3, %v1604_v2, %v2257_v18  ;;  %v1610_v53 = vsel %vm1608_vm3, %v1605_v41, %v2258_v7 }
 0x88a   :  { %v2261_v25 = vpop.permute.xlu0 %2260 }
 0x88b   :  { %v2263_v5 = vunpack.i.h.bf16 %v2261_v25  ;;  %v2262_v11 = vunpack.i.l.bf16 %v2261_v25 }
 0x88d   :  { %v1614_v60 = vsel %vm1613_vm4, %v1609_v35, %v2262_v11  ;;  %v1615_v42 = vsel %vm1613_vm4, %v1610_v53, %v2263_v5 }
 0x88e   :  { %v1618_v26 = vpack.c.bf16 %v1615_v42, %v1614_v60 }
 0x890   :  { %2197 = vmatprep.mubr.msk.bf16.mxu0 %vm127_vm0, %v1618_v26 }
 0x8aa   :  { %v2251_v16 = vpop.permute.xlu1 %2250 }
 0x8ab   :  { %v2253_v32 = vunpack.i.h.bf16 %v2251_v16  ;;  %v2252_v34 = vunpack.i.l.bf16 %v2251_v16 }
 0x8ad   :  { %v1606_v29 = vsel %vm515_vm2, %v1482_v56, %v2252_v34  ;;  %v1607_v9 = vsel %vm515_vm2, %v1485_v49, %v2253_v32  ;;  %v2285_v56 = vld [vmem:[%s3504_s4 + $0x34] ss:$8 sps:$4 sm:$0xff]  }
 0x8ae   :  { %1815 = vmatprep.subr.bf16.mxu1 %v2285_v56 }
 0x8af   :  { %1816 = vmatpush1.bf16.msra.mxu1 %v2283_v57 }
 0x8b0   :  { %1817 = vmatprep.subr.bf16.mxu1 %v2288_v10 }
 0x8b3   :  { %1818 = vmatpush1.bf16.msra.mxu1 %v2286_v46 }
 0x8b4   :  { %1819 = vmatprep.subr.bf16.mxu1 %v2291_v50 }
 0x8b7   :  { %v2266_v30 = vpop.permute.xlu1 %2265  ;;  %1820 = vmatpush1.bf16.msra.mxu1 %v2289_v52 }
 0x8b8   :  { %v2268_v21 = vunpack.i.h.bf16 %v2266_v30  ;;  %v2267_v31 = vunpack.i.l.bf16 %v2266_v30  ;;  %1821 = vmatprep.subr.bf16.mxu1 %v2294_v36 }
 0x8ba   :  { %v1611_v59 = vsel %vm1608_vm3, %v1606_v29, %v2267_v31  ;;  %v1612_v3 = vsel %vm1608_vm3, %v1607_v9, %v2268_v21 }
 0x8bb   :  { %v2271_v27 = vpop.permute.xlu1 %2270  ;;  %1822 = vmatpush1.bf16.msra.mxu1 %v2292_v22 }
 0x8bc   :  { %v2273_v40 = vunpack.i.h.bf16 %v2271_v27  ;;  %v2272_v44 = vunpack.i.l.bf16 %v2271_v27 }
 0x8be   :  { %v1616_v55 = vsel %vm1613_vm4, %v1611_v59, %v2272_v44  ;;  %v1617_v14 = vsel %vm1613_vm4, %v1612_v3, %v2273_v40  ;;  %v2295_v40 = vld [vmem:[%s3505_s5 + $0x38] sm:$0xff]   ;;  %v2296_v44 = vld [vmem:[%s3505_s5 + $0x30] sm:$0xff]   ;;  %v2297_v59 = vld [vmem:[%s3505_s5 + $0x28] sm:$0xff]  }
 0x8bf   :  { %v1619_v51 = vpack.c.bf16 %v1617_v14, %v1616_v55  ;;  %2201 = vmatprep.subr.bf16.mxu0 %v2295_v40  ;;  %v2298_v3 = vld [vmem:[%s3505_s5 + $0x20] sm:$0xff]   ;;  %v2299_v55 = vld [vmem:[%s3505_s5 + $0x18] sm:$0xff]   ;;  %v2300_v14 = vld [vmem:[%s3505_s5 + $0x10] sm:$0xff]  }
 0x8c1   :  { %2198 = vmatmul.mubr.msk.bf16.vlgmr.msra.gmra.mxu0 %vm127_vm0, %v1619_v51  ;;  %v2301_v51 = vld [vmem:[%s3505_s5 + $0x8] sm:$0xff]  }
 0x8c2   :  { %2202 = vmatpush3.bf16.msra.mxu0 %v2295_v40 }
 0x8c3   :  { %2203 = vmatprep.subr.bf16.mxu0 %v2296_v44 }
 0x8c6   :  { %2204 = vmatpush3.bf16.msra.mxu0 %v2296_v44 }
 0x8c7   :  { %2205 = vmatprep.subr.bf16.mxu0 %v2297_v59 }
 0x8ca   :  { %2206 = vmatpush3.bf16.msra.mxu0 %v2297_v59 }
 0x8cb   :  { %2207 = vmatprep.subr.bf16.mxu0 %v2298_v3 }
 0x8ce   :  { %2208 = vmatpush3.bf16.msra.mxu0 %v2298_v3 }
 0x8cf   :  { %2209 = vmatprep.subr.bf16.mxu0 %v2299_v55 }
 0x8d2   :  { %2210 = vmatpush3.bf16.msra.mxu0 %v2299_v55 }
 0x8d3   :  { %2211 = vmatprep.subr.bf16.mxu0 %v2300_v14 }
 0x8d6   :  { %2212 = vmatpush3.bf16.msra.mxu0 %v2300_v14 }
 0x8d7   :  { %2213 = vmatprep.subr.bf16.mxu0 %v2301_v51 }
 0x8da   :  { %2214 = vmatpush3.bf16.msra.mxu0 %v2301_v51 }
 0x981   :  { %v2199_v54 = vpop.f32.mrf.mxu0 }
 0x982   :  { %v3401_v4 = vadd.f32 %v2447_v8, %v2199_v54  ;;  %v2302_v54 = vld [vmem:[%s3505_s5] sm:$0xff]   ;;  %s2555_s5 = smov [#allocation8]  }
 0x983   :  { %v1692_v62 = vpop.f32.mrf.mxu0  ;;  %2215 = vmatprep.subr.bf16.mxu0 %v2302_v54  ;;  %s2020_s19 = sshll.u32 %s2555_s5, 4  ;;  %s2021_s19 = int_to_ptr.vmem [resolvable:$true] %s2020_s19 }
 0x984   :  { %v3406_v63 = vadd.f32 %v2448_v61, %v1692_v62  ;;  %v1713_v13 = vmul.f32 %v3401_v4, %v3401_v4  ;;  %2216 = vmatpush3.bf16.msra.mxu0 %v2302_v54  ;;  %s2511_s3 = scalar_lea.vmem %s2021_s19, 512  ;;  %p2516_p2 = scmp.lt.s32.totalorder %s2021_s19, %s2021_s19 }
 0x985   :  { %v2200_v19 = vpop.f32.mrf.mxu0  ;;  %p2512_p1 = scmp.ne.s32.totalorder %s2021_s19, %s2511_s3  ;;  %p2517_p3 = scmp.lt.s32.totalorder %s2511_s3, %s2511_s3 }
 0x986   :  { %v1711_v33 = vmul.f32 %v3406_v63, %v3406_v63  ;;  %v3413_v28 = vadd.f32 %v2449_v39, %v2200_v19  ;;  %v1721_v0 = vsel %vm127_vm0, %v1713_v13, 0.0 }
 0x987   :  { %v1695_v6 = vpop.f32.mrf.mxu0  ;;  %p2518_p4 = por %p2517_p3, %p2516_p2 }
 0x988   :  { %v3418_v12 = vadd.f32 %v2450_v48, %v1695_v6  ;;  %v1715_v43 = vsel %vm127_vm0, %v1711_v33, 0.0  ;;  %v1714_v37 = vmul.f32 %v3413_v28, %v3413_v28 }
 0x989   :  { %1716 = vadd.xlane.f32.xlu0 %v1715_v43  ;;  %p2519_p5 = pnand %p2518_p4, %p2512_p1 }
 0x98a   :  { %v1712_v45 = vmul.f32 %v3418_v12, %v3418_v12  ;;  %v1724_v38 = vsel %vm127_vm0, %v1714_v37, 0.0 }
 0x98c   :  { %v1718_v20 = vsel %vm127_vm0, %v1712_v45, 0.0 }
 0x98d   :  { %1722 = vadd.xlane.f32.xlu0 %v1721_v0  ;;  %1719 = vadd.xlane.f32.xlu1 %v1718_v20 }
 0x991   :  { %1725 = vadd.xlane.f32.xlu0 %v1724_v38 }
 0x9a7   :  { %1744 = vrot.lane.b32.xlu0 %v3517_v1, %s2538_s24 }
 0xa12   :  { %v1717_v47 = vpop.xlane.xlu0 %1716 }
 0xa13   :  { %v1727_v58 = vmul.f32 0.015625, %v1717_v47 }
 0xa15   :  { %v1731_v23 = vadd.f32 1e-06, %v1727_v58 }
 0xa16   :  { %v1723_v15 = vpop.xlane.xlu0 %1722  ;;  %v1720_v24 = vpop.xlane.xlu1 %1719 }
 0xa17   :  { %v1728_v7 = vmul.f32 0.015625, %v1720_v24  ;;  %2423 = vrsqrt.f32 %v1731_v23  ;;  %v1729_v18 = vmul.f32 0.015625, %v1723_v15 }
 0xa19   :  { %v1732_v25 = vadd.f32 1e-06, %v1728_v7  ;;  %v1733_v5 = vadd.f32 1e-06, %v1729_v18 }
 0xa1a   :  { %v1726_v2 = vpop.xlane.xlu0 %1725 }
 0xa1b   :  { %v1730_v41 = vmul.f32 0.015625, %v1726_v2  ;;  %2425 = vrsqrt.f32 %v1732_v25 }
 0xa1d   :  { %v1734_v11 = vadd.f32 1e-06, %v1730_v41 }
 0xa1e   :  { %v1745_v42 = vpop.permute.xlu0 %1744 }
 0xa1f   :  { %2427 = vrsqrt.f32 %v1734_v11 }
 0xa20   :  { %2429 = vrsqrt.f32 %v1733_v5 }
 0xa24   :  { %v2424_v35 = vpop.eup %2423 }
 0xa25   :  { %v1739_v53 = vmul.f32 %v2424_v35, %v3406_v63 }
 0xa27   :  { %v1747_v30 = vmul.f32 %v1745_v42, %v1739_v53 }
 0xa28   :  { %v2426_v60 = vpop.eup %2425 }
 0xa29   :  { %v1740_v26 = vmul.f32 %v2426_v60, %v3418_v12 }
 0xa2b   :  { %v1748_v32 = vmul.f32 %v1745_v42, %v1740_v26 }
 0xa2c   :  { %v2428_v16 = vpop.eup %2427 }
 0xa2d   :  { %v2430_v34 = vpop.eup %2429  ;;  %v1742_v21 = vmul.f32 %v2428_v16, %v3413_v28  ;;  %v1751_v31 = vpack.c.bf16 %v1748_v32, %v1747_v30 }
 0xa2e   :  { %v1741_v49 = vmul.f32 %v2430_v34, %v3401_v4 }
 0xa2f   :  { %2069 = vmatmul.mubr.msk.bf16.vlgmr.msra.gmra.mxu1 %vm127_vm0, %v1751_v31  ;;  %v1750_v27 = vmul.f32 %v1745_v42, %v1742_v21 }
 0xa30   :  { %1849 = vmatprep.mubr.bf16.mxu1 %v2554_v17  ;;  %v1749_v29 = vmul.f32 %v1745_v42, %v1741_v49 }
 0xa32   :  { %v1752_v9 = vpack.c.bf16 %v1750_v27, %v1749_v29 }
 0xa37   :  { %2070 = vmatmul.mubr.msk.bf16.gmra.mxu1 %vm127_vm0, %v1752_v9 }
 0xaef   :  { %v1841_v62 = vpop.f32.mrf.mxu1 }
 0xaf0   :  { %v2071_v8 = vmul.f32 -1.442695, %v1841_v62 }
 0xaf1   :  { %v1843_v61 = vpop.f32.mrf.mxu1 }
 0xaf2   :  { %2431 = vpow2.f32 %v2071_v8 }
 0xaf3   :  { %v1845_v19 = vpop.f32.mrf.mxu1 }
 0xaf4   :  { %v2072_v33 = vmul.f32 -1.442695, %v1845_v19 }
 0xaf5   :  { %v1847_v6 = vpop.f32.mrf.mxu1 }
 0xaf6   :  { %2433 = vpow2.f32 %v2072_v33 }
 0xaf7   :  { %v1851_v39 = vpop.f32.mrf.mxu1 }
 0xaf8   :  { %v2073_v48 = vmul.f32 -1.442695, %v1851_v39 }
 0xaf9   :  { %v1853_v43 = vpop.f32.mrf.mxu1 }
 0xafa   :  { %2435 = vpow2.f32 %v2073_v48 }
 0xafb   :  { %v1855_v13 = vpop.f32.mrf.mxu1 }
 0xafc   :  { %v2074_v45 = vmul.f32 -1.442695, %v1855_v13 }
 0xafd   :  { %v1857_v7 = vpop.f32.mrf.mxu1 }
 0xafe   :  { %2437 = vpow2.f32 %v2074_v45 }
 0xaff   :  { %v2432_v0 = vpop.eup %2431 }
 0xb00   :  { %v1872_v20 = vadd.f32 1.0, %v2432_v0 }
 0xb02   :  { %2439 = vrcp.f32 %v1872_v20 }
 0xb03   :  { %v2434_v37 = vpop.eup %2433 }
 0xb04   :  { %v1873_v38 = vadd.f32 1.0, %v2434_v37 }
 0xb06   :  { %2441 = vrcp.f32 %v1873_v38 }
 0xb07   :  { %v2436_v56 = vpop.eup %2435 }
 0xb08   :  { %v1874_v57 = vadd.f32 1.0, %v2436_v56 }
 0xb0a   :  { %2443 = vrcp.f32 %v1874_v57 }
 0xb0b   :  { %v2438_v10 = vpop.eup %2437 }
 0xb0c   :  { %v1875_v46 = vadd.f32 1.0, %v2438_v10 }
 0xb0e   :  { %2445 = vrcp.f32 %v1875_v46 }
 0xb0f   :  { %v2440_v50 = vpop.eup %2439 }
 0xb10   :  { %v1884_v1 = vmul.f32 %v2440_v50, %v1841_v62 }
 0xb12   :  { %v1888_v22 = vmul.f32 %v1884_v1, %v1843_v61 }
 0xb13   :  { %v2442_v52 = vpop.eup %2441 }
 0xb14   :  { %v1885_v36 = vmul.f32 %v2442_v52, %v1845_v19 }
 0xb16   :  { %v1889_v17 = vmul.f32 %v1885_v36, %v1847_v6 }
 0xb17   :  { %v2444_v47 = vpop.eup %2443 }
 0xb18   :  { %v1892_v58 = vpack.c.bf16 %v1889_v17, %v1888_v22  ;;  %v1886_v23 = vmul.f32 %v2444_v47, %v1851_v39 }
 0xb1a   :  { %2217 = vmatprep.mubr.bf16.mxu0 %v1892_v58  ;;  %v1890_v18 = vmul.f32 %v1886_v23, %v1853_v43 }
 0xb1b   :  { %v2446_v15 = vpop.eup %2445 }
 0xb1c   :  { %v1887_v24 = vmul.f32 %v2446_v15, %v1855_v13 }
 0xb1e   :  { %v1891_v25 = vmul.f32 %v1887_v24, %v1857_v7 }
 0xb20   :  { %v1893_v2 = vpack.c.bf16 %v1891_v25, %v1890_v18 }
 0xb22   :  { %2218 = vmatmul.mubr.bf16.vlgmr.msra.gmra.mxu0 %v1893_v2 }
 0xbe2   :  { %v2219_v41 = vpop.f32.mrf.mxu0 }
 0xbe3   :  { %v2009_v5 = vadd.f32 %v2219_v41, %v3401_v4 }
 0xbe4   :  { %v1992_v11 = vpop.f32.mrf.mxu0 }
 0xbe5   :  { %2013 = vst.msk [vmem:[#allocation8 + $0x10] sm:$0xff] %vm127_vm0, %v2009_v5  ;;  %v2007_v35 = vadd.f32 %v1992_v11, %v3406_v63 }
 0xbe6   :  { %v2220_v53 = vpop.f32.mrf.mxu0 }
 0xbe7   :  { %2011 = vst.msk [vmem:[#allocation8] sm:$0xff] %vm127_vm0, %v2007_v35  ;;  %v2010_v60 = vadd.f32 %v2220_v53, %v3413_v28 }
 0xbe8   :  { %v1995_v42 = vpop.f32.mrf.mxu0 }
 0xbe9   :  { %2014 = vst.msk [vmem:[#allocation8 + $0x18] sm:$0xff] %vm127_vm0, %v2010_v60  ;;  %v2008_v26 = vadd.f32 %v1995_v42, %v3418_v12 }
 0xbeb   :  { %2012 = vst.msk [vmem:[#allocation8 + $0x8] sm:$0xff] %vm127_vm0, %v2008_v26 }
 0xbec   :  { %2522 = shalt.err (!%p2519_p5)
}
 0xbed   :  { %2026 = dma.vmem_to_hbm [thread:$0]  %s2021_s19, 512, %s3506_s6, [#allocation4], %s2541_s7, %s2541_s7, %s2542_s8  }
 0xbee   :  { %2535 = dma.done.wait [#allocation4], 512  }
 0xbef   :  { %2536 = vsyncadd [#allocation4], 4294966784 }
 0xbf0   :  { %2030 = vsyncpa [#allocation3], 1 }
 0xbf1   :  { %2031 = vsyncpa [#allocation6], 1 }
 0xbf2   :  { %2032 = vsyncpa [#allocation4], 1 }

</bundles_post_ra>
